<compile_context>
chip_gen: v7x
topology: tpu7x:2x2x1
jax: 0.10.0
libtpu: 0.0.40
codegen_flags: <defaults>
</compile_context>

<pallas_src>
import functools

import jax
import jax.numpy as jnp
from jax.experimental import pallas as pl
from jax.experimental.pallas import tpu as pltpu

THRESHOLD = 1.0
NEG_SLOPE = 0.2
F_PAD = 128           # lane-aligned feature padding
COL_SRC = F_PAD - 2   # projection column carrying e_src (folded W @ att_src)
COL_DST = F_PAD - 1   # projection column carrying e_dst (folded W @ att_dst)
TILE_DST = 128        # dst-row tile: mult of 128 (f32 slices) and >=32 (int8 adj)


def _round_up(x, m):
    return ((x + m - 1) // m) * m


# ----------------------------------------------------------------------------
# Fused multi-layer, dst-row-tiled GAT kernel
# ----------------------------------------------------------------------------
def _gat_kernel(x_ref, adj_ref, w_ref, b_ref, o_ref,
                h_scr, hwb_scr, edst_scr, esrc_scr, *, tile_dst):
    l = pl.program_id(0)   # layer index (outer)
    i = pl.program_id(1)   # dst-row tile index (inner)

    # ---- once per layer: project ALL nodes on the MXU -----------------------
    @pl.when(i == 0)
    def _project():
        @pl.when(l == 0)
        def _init():
            h_scr[...] = x_ref[...]
        hw = jnp.dot(h_scr[...].astype(jnp.bfloat16),
                     w_ref[0].astype(jnp.bfloat16),
                     preferred_element_type=jnp.float32)       # [N_pad, F_PAD]
        hwb_scr[...] = hw.astype(jnp.bfloat16)                 # aggregation RHS
        edst_scr[...] = hw[:, COL_DST:COL_DST + 1]             # [N_pad, 1]
        esrc_scr[...] = hw[:, COL_SRC:COL_SRC + 1].T           # [1, N_pad]

    # ---- per dst-row tile: attention softmax + aggregation ------------------
    row0 = pl.multiple_of(i * tile_dst, tile_dst)
    cnt = adj_ref[...].astype(jnp.float32)                     # [TILE, N_pad]
    e_dst = edst_scr[pl.ds(row0, tile_dst), :]                 # [TILE, 1]

    # s[i,j] = leaky_relu(e_dst[i] + e_src[j]); cnt already zeroes non-edges,
    # so no -1e30 mask (every real row has a self loop; scores bounded by the
    # clipped activations / small inputs, so no exp-underflow of the row).
    s = e_dst + esrc_scr[...]                                  # [TILE, N_pad]
    s = jnp.where(s >= 0.0, s, NEG_SLOPE * s)
    m = jnp.max(s, axis=-1, keepdims=True)
    p = cnt * jnp.exp(s - m)                                   # 0 off-graph
    denom = jnp.maximum(jnp.sum(p, axis=-1, keepdims=True), 1e-30)

    # Aggregate un-normalized weights on the MXU, normalize afterwards in f32.
    out = jnp.dot(p.astype(jnp.bfloat16), hwb_scr[...],
                  preferred_element_type=jnp.float32)          # [TILE, F_PAD]
    out = out * pl.reciprocal(denom, approx=True) + b_ref[0]

    # act_fn: clamp(x, -THRESHOLD, THRESHOLD) after every layer.
    h_new = jnp.clip(out, -THRESHOLD, THRESHOLD)
    h_scr[pl.ds(row0, tile_dst), :] = h_new                    # next layer's input
    o_ref[...] = h_new                                         # last layer wins


def _vmem_limit_bytes(n_pad, tile_dst):
    est = (2 * tile_dst * n_pad                       # adj int8, double-buffered
           + 2 * n_pad * F_PAD * 4                    # resident x
           + 2 * (F_PAD * F_PAD * 4 + F_PAD * 4)      # W + b, double-buffered
           + 2 * tile_dst * F_PAD * 4                 # output tile
           + n_pad * F_PAD * 6 + 8 * n_pad            # h/hw/e scratch
           + 4 * tile_dst * n_pad * 4)                # s/p/cnt live temporaries
    return int(min(max(2 * est, 32 * 1024 * 1024), 100 * 1024 * 1024))


def fused_gat_forward(x_pad, adj, w_stack, b_stack, *, tile_dst=TILE_DST):
    n_pad = x_pad.shape[0]
    num_layers = w_stack.shape[0]
    assert n_pad % tile_dst == 0
    num_tiles = n_pad // tile_dst

    kernel = functools.partial(_gat_kernel, tile_dst=tile_dst)
    return pl.pallas_call(
        kernel,
        out_shape=jax.ShapeDtypeStruct((n_pad, F_PAD), jnp.float32),
        grid_spec=pltpu.PrefetchScalarGridSpec(
            num_scalar_prefetch=0,
            grid=(num_layers, num_tiles),
            in_specs=[
                pl.BlockSpec((n_pad, F_PAD), lambda l, i: (0, 0)),        # x (resident)
                pl.BlockSpec((tile_dst, n_pad), lambda l, i: (i, 0)),     # adj tile (int8)
                pl.BlockSpec((1, F_PAD, F_PAD), lambda l, i: (l, 0, 0)),  # W_l (with folded att cols)
                pl.BlockSpec((1, 1, F_PAD), lambda l, i: (l, 0, 0)),      # b_l
            ],
            out_specs=pl.BlockSpec((tile_dst, F_PAD), lambda l, i: (i, 0)),
            scratch_shapes=[
                pltpu.VMEM((n_pad, F_PAD), jnp.float32),   # h: activations (prev layer / x)
                pltpu.VMEM((n_pad, F_PAD), jnp.bfloat16),  # hw: projection (MXU RHS)
                pltpu.VMEM((n_pad, 1), jnp.float32),       # e_dst column
                pltpu.VMEM((1, n_pad), jnp.float32),       # e_src row
            ],
        ),
        compiler_params=pltpu.CompilerParams(
            dimension_semantics=("arbitrary", "arbitrary"),
            vmem_limit_bytes=_vmem_limit_bytes(n_pad, tile_dst),
        ),
    )(x_pad, adj, w_stack, b_stack)


# ----------------------------------------------------------------------------
# Host-side glue: params, padding / folding, dense adjacency, forward
# ----------------------------------------------------------------------------
def init_params(key, input_dim=2, hidden_dim=2, output_dim=2, num_layers=2):
    """Deterministic synthetic params matching GATV1Module's layer stack."""
    dims = [(input_dim, hidden_dim)]
    for _ in range(num_layers - 2):
        dims.append((hidden_dim, hidden_dim))
    dims.append((hidden_dim, output_dim))

    layers = []
    for fin, fout in dims:
        key, k1, k2, k3 = jax.random.split(key, 4)
        w = jax.random.normal(k1, (fin, fout), jnp.float32) / jnp.sqrt(fin)
        a_src = jax.random.normal(k2, (fout,), jnp.float32) * 0.5
        a_dst = jax.random.normal(k3, (fout,), jnp.float32) * 0.5
        b = jnp.zeros((fout,), jnp.float32)
        layers.append(dict(w=w, a_src=a_src, a_dst=a_dst, b=b, fin=fin, fout=fout))
    return layers


def pack_params(layers):
    """Pad W to [F_PAD, F_PAD] and fold W@att_src / W@att_dst into two spare
    zero-padded columns so the MXU produces the attention dots for free."""
    ws, bs = [], []
    for p in layers:
        fin, fout = p["fin"], p["fout"]
        assert fin <= F_PAD and fout <= F_PAD - 2, "need 2 spare columns for folded att dots"
        wp = jnp.zeros((F_PAD, F_PAD), jnp.float32)
        wp = wp.at[:fin, :fout].set(p["w"])
        wp = wp.at[:fin, COL_SRC].set(p["w"] @ p["a_src"])
        wp = wp.at[:fin, COL_DST].set(p["w"] @ p["a_dst"])
        ws.append(wp)
        bs.append(jnp.zeros((1, F_PAD), jnp.float32).at[0, :fout].set(p["b"]))
    return jnp.stack(ws), jnp.stack(bs)


def build_dense_adj(edge_index, num_nodes, n_pad):
    """adj[i, j] = multiplicity of edge j -> i (int8); self loops forced to 1
    (matches remove_self_loops + add_self_loops in GATConv)."""
    src, dst = edge_index[0], edge_index[1]
    adj = jnp.zeros((n_pad, n_pad), jnp.int8)
    adj = adj.at[dst, src].add(jnp.int8(1))          # parallel edges accumulate
    diag = jnp.arange(num_nodes)
    adj = adj.at[diag, diag].set(jnp.int8(1))        # exactly one self loop
    return adj


def gatv1_forward(x, edge_index, layers):
    n, fin = x.shape
    n_pad = _round_up(max(n, TILE_DST), TILE_DST)
    adj = build_dense_adj(edge_index, n, n_pad)
    x_pad = jnp.zeros((n_pad, F_PAD), jnp.float32).at[:n, :fin].set(x)
    w_stack, b_stack = pack_params(layers)
    out_pad = fused_gat_forward(x_pad, adj, w_stack, b_stack)
    return out_pad[:n, :layers[-1]["fout"]]


# Pure-JAX reference (f32 throughout) for a loose sanity check.
def gatv1_reference(x, edge_index, layers):
    n = x.shape[0]
    src, dst = edge_index[0], edge_index[1]
    cnt = jnp.zeros((n, n), jnp.float32).at[dst, src].add(1.0)
    cnt = cnt.at[jnp.arange(n), jnp.arange(n)].set(1.0)
    h = x
    for p in layers:
        hw = h @ p["w"]
        e_src = hw @ p["a_src"]
        e_dst = hw @ p["a_dst"]
        s = e_dst[:, None] + e_src[None, :]
        s = jnp.where(s >= 0.0, s, NEG_SLOPE * s)
        s = jnp.where(cnt > 0.0, s, -jnp.inf)
        m = jnp.max(s, axis=-1, keepdims=True)
        pe = cnt * jnp.exp(s - m)
        alpha = pe / jnp.sum(pe, axis=-1, keepdims=True)
        h = jnp.clip(alpha @ hw + p["b"], -THRESHOLD, THRESHOLD)
    return h


if __name__ == "__main__":
    key = jax.random.PRNGKey(0)
    k_x, k_e, k_p = jax.random.split(key, 3)

    num_nodes = 16
    input_dim, hidden_dim, output_dim, num_layers = 2, 2, 2, 2
    num_edges = 32

    x = jax.random.normal(k_x, (num_nodes, input_dim), jnp.float32)
    edge_index = jax.random.randint(k_e, (2, num_edges), 0, num_nodes, jnp.int32)

    layers = init_params(k_p, input_dim, hidden_dim, output_dim, num_layers)

    out = gatv1_forward(x, edge_index, layers)
    jax.block_until_ready(out)
    assert out.shape == (num_nodes, output_dim)

    ref = gatv1_reference(x, edge_index, layers)
    err = float(jnp.max(jnp.abs(out - ref)))
    assert err < 5e-2, f"mismatch vs reference: max abs err {err}"
    print("KERNEL_OK")
</pallas_src>

<mosaic_0001>
module attributes {stable_mosaic.version = 11 : i64} {
  func.func @_gat_kernel(%arg0: i32, %arg1: i32, %arg2: memref<128x128xf32, #tpu.memory_space<vmem>>, %arg3: memref<128x128xi8, #tpu.memory_space<vmem>>, %arg4: memref<1x128x128xf32, #tpu.memory_space<vmem>>, %arg5: memref<1x1x128xf32, #tpu.memory_space<vmem>>, %arg6: memref<128x128xf32, #tpu.memory_space<vmem>>, %arg7: memref<128x128xf32, #tpu.memory_space<vmem>>, %arg8: memref<128x128xbf16, #tpu.memory_space<vmem>>, %arg9: memref<128x1xf32, #tpu.memory_space<vmem>>, %arg10: memref<1x128xf32, #tpu.memory_space<vmem>>) attributes {dimension_semantics = [#tpu.dimension_semantics<arbitrary>, #tpu.dimension_semantics<arbitrary>], iteration_bounds = array<i64: 2, 1>, scalar_prefetch = 0 : i64, scratch_operands = 4 : i64, tpu.core_type = #tpu.core_type<tc>, window_params = [{pipeline_mode = #tpu.pipeline_mode<synchronous>, transform_indices = @transform_0, window_bounds = array<i64: 128, 128>}, {transform_indices = @transform_1, window_bounds = array<i64: 128, 128>}, {transform_indices = @transform_2, window_bounds = array<i64: 1, 128, 128>}, {transform_indices = @transform_3, window_bounds = array<i64: 1, 1, 128>}, {transform_indices = @transform_4, window_bounds = array<i64: 128, 128>}]} {
    %c0_i32 = arith.constant 0 : i32
    %0 = arith.cmpi eq, %arg1, %c0_i32 : i32
    %1 = arith.extui %0 : i1 to i32
    %c0_i32_0 = arith.constant 0 : i32
    %2 = arith.cmpi ne, %1, %c0_i32_0 : i32
    scf.if %2 {
      %c0_i32_20 = arith.constant 0 : i32
      %45 = arith.cmpi eq, %arg0, %c0_i32_20 : i32
      %46 = arith.extui %45 : i1 to i32
      %c0_i32_21 = arith.constant 0 : i32
      %47 = arith.cmpi ne, %46, %c0_i32_21 : i32
      scf.if %47 {
        %c0_34 = arith.constant 0 : index
        %c0_35 = arith.constant 0 : index
        %61 = vector.load %arg2[%c0_34, %c0_35] : memref<128x128xf32, #tpu.memory_space<vmem>>, vector<128x128xf32>
        %c0_36 = arith.constant 0 : index
        %c0_37 = arith.constant 0 : index
        %62 = vector.load %arg7[%c0_36, %c0_37] : memref<128x128xf32, #tpu.memory_space<vmem>>, vector<128x128xf32>
        tpu.vector_store %arg7[%c0_36, %c0_37], %61 {strides = array<i32>} : memref<128x128xf32, #tpu.memory_space<vmem>>, vector<128x128xf32>,
      } else {
      }
      %c0_22 = arith.constant 0 : index
      %c0_23 = arith.constant 0 : index
      %48 = vector.load %arg7[%c0_22, %c0_23] : memref<128x128xf32, #tpu.memory_space<vmem>>, vector<128x128xf32>
      %49 = arith.truncf %48 : vector<128x128xf32> to vector<128x128xbf16>
      %c0_24 = arith.constant 0 : index
      %c0_25 = arith.constant 0 : index
      %c0_26 = arith.constant 0 : index
      %50 = vector.load %arg4[%c0_24, %c0_25, %c0_26] : memref<1x128x128xf32, #tpu.memory_space<vmem>>, vector<1x128x128xf32>
      %51 = vector.shape_cast %50 : vector<1x128x128xf32> to vector<128x128xf32>
      %52 = arith.truncf %51 : vector<128x128xf32> to vector<128x128xbf16>
      %cst_27 = arith.constant dense<0.000000e+00> : vector<128x128xf32>
      %53 = tpu.matmul %49, %52, %cst_27 {dimension_numbers = #tpu.dot_dimension_numbers<[1], [0], [0], [1], [0, 0, 1, 1], [], []>} : vector<128x128xbf16>, vector<128x128xbf16>, vector<128x128xf32> -> vector<128x128xf32>
      %54 = arith.truncf %53 : vector<128x128xf32> to vector<128x128xbf16>
      %c0_28 = arith.constant 0 : index
      %c0_29 = arith.constant 0 : index
      %55 = vector.load %arg8[%c0_28, %c0_29] : memref<128x128xbf16, #tpu.memory_space<vmem>>, vector<128x128xbf16>
      tpu.vector_store %arg8[%c0_28, %c0_29], %54 {strides = array<i32>} : memref<128x128xbf16, #tpu.memory_space<vmem>>, vector<128x128xbf16>,
      %56 = vector.extract_strided_slice %53 {offsets = [0, 127], sizes = [128, 1], strides = [1, 1]} : vector<128x128xf32> to vector<128x1xf32>
      %c0_30 = arith.constant 0 : index
      %c0_31 = arith.constant 0 : index
      %57 = vector.load %arg9[%c0_30, %c0_31] : memref<128x1xf32, #tpu.memory_space<vmem>>, vector<128x1xf32>
      tpu.vector_store %arg9[%c0_30, %c0_31], %56 {strides = array<i32>} : memref<128x1xf32, #tpu.memory_space<vmem>>, vector<128x1xf32>,
      %58 = vector.extract_strided_slice %53 {offsets = [0, 126], sizes = [128, 1], strides = [1, 1]} : vector<128x128xf32> to vector<128x1xf32>
      %59 = tpu.transpose %58, [1, 0] : vector<128x1xf32> -> vector<1x128xf32>
      %c0_32 = arith.constant 0 : index
      %c0_33 = arith.constant 0 : index
      %60 = vector.load %arg10[%c0_32, %c0_33] : memref<1x128xf32, #tpu.memory_space<vmem>>, vector<1x128xf32>
      tpu.vector_store %arg10[%c0_32, %c0_33], %59 {strides = array<i32>} : memref<1x128xf32, #tpu.memory_space<vmem>>, vector<1x128xf32>,
    } else {
    }
    %c128_i32 = arith.constant 128 : i32
    %3 = arith.muli %arg1, %c128_i32 : i32
    %4 = tpu.assume_multiple %3, 128 : i32
    %c0 = arith.constant 0 : index
    %c0_1 = arith.constant 0 : index
    %5 = vector.load %arg3[%c0, %c0_1] : memref<128x128xi8, #tpu.memory_space<vmem>>, vector<128x128xi8>
    %6 = arith.sitofp %5 : vector<128x128xi8> to vector<128x128xf32>
    %7 = arith.index_cast %4 : i32 to index
    %c0_2 = arith.constant 0 : index
    %8 = vector.load %arg9[%7, %c0_2] : memref<128x1xf32, #tpu.memory_space<vmem>>, vector<128x1xf32>
    %c0_3 = arith.constant 0 : index
    %c0_4 = arith.constant 0 : index
    %9 = vector.load %arg10[%c0_3, %c0_4] : memref<1x128xf32, #tpu.memory_space<vmem>>, vector<1x128xf32>
    %10 = vector.broadcast %8 : vector<128x1xf32> to vector<128x128xf32>
    %11 = vector.broadcast %9 : vector<1x128xf32> to vector<128x128xf32>
    %12 = arith.addf %10, %11 : vector<128x128xf32>
    %cst = arith.constant 0.000000e+00 : f32
    %13 = vector.broadcast %cst : f32 to vector<128x128xf32>
    %14 = arith.cmpf oge, %12, %13 : vector<128x128xf32>
    %cst_5 = arith.constant 2.000000e-01 : f32
    %15 = vector.broadcast %cst_5 : f32 to vector<128x128xf32>
    %16 = arith.mulf %15, %12 : vector<128x128xf32>
    %17 = arith.select %14, %12, %16 : vector<128x128xi1>, vector<128x128xf32>
    %cst_6 = arith.constant dense<0xFF800000> : vector<128xf32>
    %18 = vector.multi_reduction <maximumf>, %17, %cst_6 [1] : vector<128x128xf32> to vector<128xf32>
    %19 = vector.shape_cast %18 : vector<128xf32> to vector<128x1xf32>
    %20 = vector.broadcast %19 : vector<128x1xf32> to vector<128x128xf32>
    %21 = arith.subf %17, %20 : vector<128x128xf32>
    %22 = math.exp %21 : vector<128x128xf32>
    %23 = arith.mulf %6, %22 : vector<128x128xf32>
    %cst_7 = arith.constant dense<0.000000e+00> : vector<128xf32>
    %24 = vector.multi_reduction <add>, %23, %cst_7 [1] : vector<128x128xf32> to vector<128xf32>
    %25 = vector.shape_cast %24 : vector<128xf32> to vector<128x1xf32>
    %cst_8 = arith.constant 1.000000e-30 : f32
    %26 = vector.broadcast %cst_8 : f32 to vector<128x1xf32>
    %27 = arith.maximumf %25, %26 : vector<128x1xf32>
    %28 = arith.truncf %23 : vector<128x128xf32> to vector<128x128xbf16>
    %c0_9 = arith.constant 0 : index
    %c0_10 = arith.constant 0 : index
    %29 = vector.load %arg8[%c0_9, %c0_10] : memref<128x128xbf16, #tpu.memory_space<vmem>>, vector<128x128xbf16>
    %cst_11 = arith.constant dense<0.000000e+00> : vector<128x128xf32>
    %30 = tpu.matmul %28, %29, %cst_11 {dimension_numbers = #tpu.dot_dimension_numbers<[1], [0], [0], [1], [0, 0, 1, 1], [], []>} : vector<128x128xbf16>, vector<128x128xbf16>, vector<128x128xf32> -> vector<128x128xf32>
    %31 = tpu.reciprocal %27 {approx = true} : vector<128x1xf32> -> vector<128x1xf32>
    %32 = vector.broadcast %31 : vector<128x1xf32> to vector<128x128xf32>
    %33 = arith.mulf %30, %32 : vector<128x128xf32>
    %c0_12 = arith.constant 0 : index
    %c0_13 = arith.constant 0 : index
    %c0_14 = arith.constant 0 : index
    %34 = vector.load %arg5[%c0_12, %c0_13, %c0_14] : memref<1x1x128xf32, #tpu.memory_space<vmem>>, vector<1x1x128xf32>
    %35 = vector.shape_cast %34 : vector<1x1x128xf32> to vector<1x128xf32>
    %36 = vector.broadcast %35 : vector<1x128xf32> to vector<128x128xf32>
    %37 = arith.addf %33, %36 : vector<128x128xf32>
    %cst_15 = arith.constant -1.000000e+00 : f32
    %cst_16 = arith.constant 1.000000e+00 : f32
    %38 = vector.broadcast %cst_15 : f32 to vector<128x128xf32>
    %39 = arith.maximumf %38, %37 : vector<128x128xf32>
    %40 = vector.broadcast %cst_16 : f32 to vector<128x128xf32>
    %41 = arith.minimumf %40, %39 : vector<128x128xf32>
    %42 = arith.index_cast %4 : i32 to index
    %c0_17 = arith.constant 0 : index
    %43 = vector.load %arg7[%42, %c0_17] : memref<128x128xf32, #tpu.memory_space<vmem>>, vector<128x128xf32>
    tpu.vector_store %arg7[%42, %c0_17], %41 {strides = array<i32>} : memref<128x128xf32, #tpu.memory_space<vmem>>, vector<128x128xf32>,
    %c0_18 = arith.constant 0 : index
    %c0_19 = arith.constant 0 : index
    %44 = vector.load %arg6[%c0_18, %c0_19] : memref<128x128xf32, #tpu.memory_space<vmem>>, vector<128x128xf32>
    tpu.vector_store %arg6[%c0_18, %c0_19], %41 {strides = array<i32>} : memref<128x128xf32, #tpu.memory_space<vmem>>, vector<128x128xf32>,
    return
  }
  func.func @transform_0(%arg0: i32, %arg1: i32) -> (i32, i32) {
    %c0_i32 = arith.constant 0 : i32
    %c0_i32_0 = arith.constant 0 : i32
    %c0_i32_1 = arith.constant 0 : i32
    return %c0_i32, %c0_i32_0 : i32, i32
  }
  func.func @transform_1(%arg0: i32, %arg1: i32) -> (i32, i32) {
    %c0_i32 = arith.constant 0 : i32
    %c0_i32_0 = arith.constant 0 : i32
    return %arg1, %c0_i32 : i32, i32
  }
  func.func @transform_2(%arg0: i32, %arg1: i32) -> (i32, i32, i32) {
    %c0_i32 = arith.constant 0 : i32
    %c0_i32_0 = arith.constant 0 : i32
    %c0_i32_1 = arith.constant 0 : i32
    return %arg0, %c0_i32, %c0_i32_0 : i32, i32, i32
  }
  func.func @transform_3(%arg0: i32, %arg1: i32) -> (i32, i32, i32) {
    %c0_i32 = arith.constant 0 : i32
    %c0_i32_0 = arith.constant 0 : i32
    %c0_i32_1 = arith.constant 0 : i32
    return %arg0, %c0_i32, %c0_i32_0 : i32, i32, i32
  }
  func.func @transform_4(%arg0: i32, %arg1: i32) -> (i32, i32) {
    %c0_i32 = arith.constant 0 : i32
    %c0_i32_0 = arith.constant 0 : i32
    return %arg1, %c0_i32 : i32, i32
  }
}

</mosaic_0001>

<bundles_post_ra>
// kernel: tpu_custom_call.1
= control target key start
LH: loop header
LB: loop body
LE: loop exit
PB: predicated region body
PF: predicated region fallthrough
CT: control target
= control target key end

     0   :  { %9 = vsyncpa [#allocation7], 0  ;;  %s2248_s0 = inlined_call_operand.hbm [shape: f32[128,128], index: 0, kind: input, shape index: {}]   ;;  %s2249_s1 = inlined_call_operand.hbm [shape: s8[128,128], index: 1, kind: input, shape index: {}]   ;;  %s2250_s2 = inlined_call_operand.hbm [shape: f32[2,128,128], index: 2, kind: input, shape index: {}]   ;;  %s2251_s3 = inlined_call_operand.vmem [shape: f32[2,1,128], index: 3, kind: input, shape index: {}]   ;;  %s2252_s4 = inlined_call_operand.hbm [shape: f32[128,128], index: 4, kind: output, shape index: {}]  }
   0x1   :  { %10 = vsyncpa [#allocation10], 0 }
   0x2   :  { %11 = vsyncpa [#allocation8], 0  ;;  %s1825_s15 = smov 0   ;;  %s1827_s16 = smov 0  }
   0x3   :  { %s1829_s17 = smov 0   ;;  %s1831_s18 = smov 0  }
   0x4   :  { %s1833_s19 = smov 0   ;;  %s1835_s20 = smov 0  }
   0x5 LB: > { %s1854_s21 = sadd.s32 4294967295, %s1787_s20   ;;  %p90_p0 = scmp.ne.s32.totalorder %s1775_s17, %s1771_s16  ;;  %s1787_s20 = sphi %s1835_s20, %s17_s20   ;;  %s1783_s19 = sphi %s1833_s19, %s2272_s19   ;;  %s1779_s18 = sphi %s1831_s18, %s2271_s18   ;;  %s1775_s17 = sphi %s1829_s17, %s2270_s17   ;;  %s1771_s16 = sphi %s1827_s16, %s2269_s16   ;;  %s1767_s15 = sphi %s1825_s15, %s2268_s15  }
   0x6   : > { %p91_p1 = scmp.eq.s32.totalorder %s1787_s20, 0  ;;  %p96_p2 = scmp.ne.s32.totalorder %s1771_s16, %s1767_s15 }
   0x7   : > { %p2253_p3 = scmp.eq.s32.totalorder %s1854_s21, 0  ;;  %p1326_p4 = scmp.ge.s32.totalorder %s1787_s20, 1 }
   0x8   : > { %p92_p5 = por %p91_p1, %p90_p0  ;;  %p159_p6 = scmp.lt.s32.totalorder %s1787_s20, 3 }
   0x9   : > { %p1865_p7 = por %p2253_p3, %p96_p2  ;;  %s1789_s24 = smov [#allocation6]  }
   0xa   : > { %p1869_p8 = pnand %p1326_p4, %p159_p6  ;;  %s171_s25 = sshll.u32 %s1789_s24, 4  ;;  %s172_s25 = int_to_ptr.vmem [resolvable:$true] %s171_s25 }
   0xb   : > { %s2257_s22 = scalar_select %p1865_p7, 1, 0 }
   0xc   : > { %s2258_s23 = scalar_select %p1869_p8, 1, 0 }
   0xd   : > { %p1471_p9 = pneg %p1869_p8  ;;  %p1484_p11 = scmp.lt.s32.totalorder %s1787_s20, 2 }
   0xe   : > { %s1613_s30 = scalar_lea.hbm %s2248_s0, 2048 }
   0xf   : > { %p1877_p10 = pnand %p1471_p9, %p2253_p3  ;;  %p1882_p12 = pnand %p1484_p11, %p92_p5 }
  0x10   : > { %p1614_p13 = scmp.ne.s32.totalorder %s2248_s0, %s1613_s30  ;;  %p1620_p4 = scmp.lt.u32.totalorder %s1613_s30, %s2248_s0 }
  0x11   : > { %s2260_s27 = scalar_select %p1882_p12, 1, 0 }
  0x12   : > { %p1615_p0 = pneg %p1877_p10 }
  0x14   : > { %p1616_p1 = pnand %p1615_p0, %p1614_p13 }
  0x16   : > { %p1617_p2 = pneg %p1616_p1 }
  0x18   : > { %p1622_p5 = pnand %p1620_p4, %p1617_p2 }
  0x1a   : > { %1625 = shalt.err (!%p1622_p5)
}
  0x1b   : > { %s1626_s9 = scalar_lea.vmem %s172_s25, 2048  ;;  %p1634_p3 = scmp.lt.s32.totalorder %s172_s25, %s172_s25 }
  0x1c   : > { %p1627_p6 = scmp.ne.s32.totalorder %s172_s25, %s1626_s9  ;;  %p1635_p7 = scmp.lt.s32.totalorder %s1626_s9, %s1626_s9 }
  0x1e   : > { %p1629_p9 = pnand %p1627_p6, %p1615_p0  ;;  %p1636_p8 = por %p1635_p7, %p1634_p3 }
  0x20   : > { %p1630_p11 = pneg %p1629_p9 }
  0x22   : > { %p1637_p12 = pnand %p1636_p8, %p1630_p11 }
  0x24   : > { %1640 = shalt.err (!%p1637_p12)
}
  0x25   : > { %s1790_s10 = smov 128   ;;  %s1791_s11 = smov 8  }
  0x26   : > { %1474 = dma.hbm_to_vmem [thread:$0]  (!%p1877_p10), %s2248_s0, 2048, %s172_s25, [#allocation7], %s1790_s10, %s1790_s10, %s1791_s11  }
  0x27   : > { %s1792_s14 = smov [#allocation9]   ;;  %s1641_s29 = scalar_lea.hbm %s2249_s1, 512 }
  0x28   : > { %s187_s15 = sshll.u32 %s1792_s14, 4  ;;  %p1642_p3 = scmp.ne.s32.totalorder %s2249_s1, %s1641_s29  ;;  %s188_s15 = int_to_ptr.vmem [resolvable:$true] %s187_s15 }
  0x29   : > { %p1648_p12 = scmp.lt.u32.totalorder %s1641_s29, %s2249_s1 }
  0x2a   : > { %p1644_p7 = pnand %p1642_p3, %p1615_p0 }
  0x2c   : > { %p1645_p8 = pneg %p1644_p7 }
  0x2e   : > { %p1650_p13 = pnand %p1648_p12, %p1645_p8 }
  0x30   : > { %1653 = shalt.err (!%p1650_p13)
}
  0x31   : > { %s1654_s25 = scalar_lea.vmem %s188_s15, 512  ;;  %p1662_p5 = scmp.lt.s32.totalorder %s188_s15, %s188_s15 }
  0x32   : > { %p1655_p1 = scmp.ne.s32.totalorder %s188_s15, %s1654_s25  ;;  %p1663_p6 = scmp.lt.s32.totalorder %s1654_s25, %s1654_s25 }
  0x34   : > { %p1657_p2 = pnand %p1655_p1, %p1615_p0  ;;  %p1664_p9 = por %p1663_p6, %p1662_p5 }
  0x36   : > { %p1658_p4 = pneg %p1657_p2 }
  0x38   : > { %p1665_p11 = pnand %p1664_p9, %p1658_p4 }
  0x3a   : > { %1668 = shalt.err (!%p1665_p11)
}
  0x3b   : > { %1477 = dma.hbm_to_vmem [thread:$0]  (!%p1877_p10), %s2249_s1, 512, %s188_s15, [#allocation10], %s1790_s10, %s1790_s10, %s1791_s11  }
  0x3c   : > { %s29_s12 = sadd.s32 1, %s1783_s19  ;;  %s83_s13 = sadd.s32 1, %s1775_s17 }
  0x3d   : > { %p31_p0 = scmp.ge.s32.totalorder %s29_s12, 2  ;;  %s201_s14 = sand.u32 1, %s1787_s20  }
  0x3e   : > { %s203_s26 = sand.u32 1, %s1775_s17   ;;  %s1360_s28 = sshll.u32 %s1783_s19, 11 }
  0x3f   : > { %s2274_s12 = smov (%p31_p0, %s29_s12), 0  ;;  %s1330_s24 = sshll.u32 %s203_s26, 7 }
  0x40   : > { %s80_s29 = ssub.s32 %s1783_s19, %s2274_s12  ;;  %s1946_s6 = scalar_lea.hbm %s2250_s2, %s1360_s28 }
  0x41   : > { %p81_p3 = scmp.eq.s32.totalorder %s80_s29, 0  ;;  %s205_s15 = scalar_lea.vmem [#allocation11], %s1330_s24 }
  0x42   : > { %s212_s7 = sshll.u32 %s205_s15, 4  ;;  %s1953_s8 = scalar_lea.sflag [#allocation7], %s201_s14  ;;  %s1951_s7 = int_to_ptr.vmem [resolvable:$true] %s212_s7 }
  0x43   : > { %s1949_s25 = scalar_select %p81_p3, %s1775_s17, %s83_s13  }
  0x44   : > { %s1669_s9 = scalar_lea.hbm %s1946_s6, 2048  ;;  %p2261_p7 = scmp.ne.s32.totalorder %s2260_s27, 0 }
  0x45   : > { %p1670_p10 = scmp.ne.s32.totalorder %s1946_s6, %s1669_s9  ;;  %s1674_s29 = scalar_lea.hbm %s2250_s2, 4096 }
  0x46   : > { %p1671_p8 = pneg %p2261_p7  ;;  %p1675_p1 = scmp.lt.u32.totalorder %s1946_s6, %s2250_s2 }
  0x47   : > { %p1676_p2 = scmp.lt.u32.totalorder %s1674_s29, %s1669_s9  ;;  %p1678_p5 = scmp.lt.u32.totalorder %s1669_s9, %s1946_s6 }
  0x48   : > { %p1672_p12 = pnand %p1671_p8, %p1670_p10 }
  0x49   : > { %p1677_p4 = por %p1676_p2, %p1675_p1 }
  0x4a   : > { %p1673_p13 = pneg %p1672_p12 }
  0x4b   : > { %p1679_p6 = por %p1678_p5, %p1677_p4 }
  0x4d   : > { %p1680_p9 = pnand %p1679_p6, %p1673_p13 }
  0x4f   : > { %1683 = shalt.err (!%p1680_p9)
}
  0x50   : > { %s1684_s13 = scalar_lea.vmem %s1951_s7, 2048  ;;  %s1793_s14 = smov [#allocation11]  }
  0x51   : > { %p1685_p11 = scmp.ne.s32.totalorder %s1951_s7, %s1684_s13  ;;  %s1689_s5 = sshll.u32 %s1793_s14, 4  ;;  %s1690_s5 = int_to_ptr.vmem [resolvable:$false] %s1689_s5 }
  0x52   : > { %s1691_s15 = scalar_lea.vmem %s1690_s5, 4096  ;;  %p1692_p10 = scmp.lt.s32.totalorder %s1951_s7, %s1690_s5 }
  0x53   : > { %p1687_p0 = pnand %p1685_p11, %p1671_p8  ;;  %p1693_p12 = scmp.lt.s32.totalorder %s1691_s15, %s1684_s13 }
  0x55   : > { %p1688_p3 = pneg %p1687_p0  ;;  %p1694_p1 = por %p1693_p12, %p1692_p10 }
  0x57   : > { %p1695_p2 = pnand %p1694_p1, %p1688_p3 }
  0x59   : > { %1698 = shalt.err (!%p1695_p2)
}
  0x5a   : > { %1481 = dma.hbm_to_vmem [thread:$0]  (!%p2261_p7), %s1946_s6, 2048, %s1951_s7, %s1953_s8, %s1790_s10, %s1790_s10, %s1791_s11  }
  0x5b   : > { %p2262_p8 = scmp.ne.s32.totalorder %s2258_s23, 0 }
  0x5c   : > { %p2263_p13 = scmp.eq.s32.totalorder (!%p2262_p8), %s1854_s21, 0 }
  0x5d   : > { %230 = sbr.rel (%p2262_p8) target bundleno = 1164 (0x48c), region = 36 }
  0x64   : > { %1750 = dma.done.wait (%p2263_p13), [#allocation7], 2048   ;;  %p2264_p4 = pmov %p2263_p13 }
  0x66   : > { %1752 = vsyncadd (%p2264_p4), [#allocation7], 4294965248  ;;  %p2265_p5 = pmov %p2264_p4 }
  0x67   : > { %p2266_p6 = pmov %p2264_p4 }
  0x68   : > { %1754 = dma.done.wait (%p2265_p5), [#allocation10], 512  }
  0x69   : > { %1756 = vsyncadd (%p2266_p6), [#allocation10], 4294966784  ;;  %s240_s27 = sand.u32 1, %s1854_s21   ;;  %s242_s10 = sand.u32 1, %s1771_s16  }
  0x6a   : > { %s1336_s11 = sshll.u32 %s242_s10, 7  ;;  %s241_s23 = scalar_lea.sflag [#allocation7], %s240_s27 }
  0x6b   : > { %s1996_s6 = scalar_lea.vmem [#allocation11], %s1336_s11  ;;  %p2267_p7 = scmp.ne.s32.totalorder %s2257_s22, 0 }
  0x6d   : > { %1758 = dma.done.wait (%p2267_p7), %s241_s23, 2048  }
  0x6e   : > { %1760 = vsyncadd (%p2267_p7), %s241_s23, 4294965248  ;;  %p268_p9 = scmp.lt.s32.totalorder %s1779_s18, 1  ;;  %p1337_p11 = scmp.ne.s32.totalorder %s1779_s18, 0 }
  0x6f   : > { %v281_v0 = vld [vmem:[#allocation6] sm:$0xff] (!%p1337_p11)  ;;  %v282_v1 = vld [vmem:[#allocation6 + $0x8] sm:$0xff] (!%p1337_p11)  ;;  %v283_v2 = vld [vmem:[#allocation6 + $0x10] sm:$0xff] (!%p1337_p11) }
  0x70   : > { %s2004_s7 = scalar_select %p268_p9, %s1779_s18, 1 }
  0x71   : > { %280 = sbr.rel (%p1337_p11) target bundleno = 121 (0x79), region = 56  ;;  %297 = vst [vmem:[#allocation2] sm:$0xff] (!%p1337_p11), %v281_v0  ;;  %298 = vst [vmem:[#allocation2 + $0x8] sm:$0xff] (!%p1337_p11), %v282_v1  ;;  %v284_v3 = vld [vmem:[#allocation6 + $0x18] sm:$0xff] (!%p1337_p11)  ;;  %v285_v4 = vld [vmem:[#allocation6 + $0x20] sm:$0xff] (!%p1337_p11) }
  0x72   : > { %s270_s26 = scalar_lea.vmem %s2251_s3, %s2004_s7  ;;  %299 = vst [vmem:[#allocation2 + $0x10] sm:$0xff] (!%p1337_p11), %v283_v2  ;;  %v286_v5 = vld [vmem:[#allocation6 + $0x28] sm:$0xff] (!%p1337_p11)  ;;  %300 = vst [vmem:[#allocation2 + $0x18] sm:$0xff] (!%p1337_p11), %v284_v3  ;;  %v287_v6 = vld [vmem:[#allocation6 + $0x30] sm:$0xff] (!%p1337_p11) }
  0x73   : > { %301 = vst [vmem:[#allocation2 + $0x20] sm:$0xff] (!%p1337_p11), %v285_v4  ;;  %302 = vst [vmem:[#allocation2 + $0x28] sm:$0xff] (!%p1337_p11), %v286_v5  ;;  %v288_v7 = vld [vmem:[#allocation6 + $0x38] sm:$0xff] (!%p1337_p11)  ;;  %v289_v8 = vld [vmem:[#allocation6 + $0x40] sm:$0xff] (!%p1337_p11) }
  0x74   : > { %303 = vst [vmem:[#allocation2 + $0x30] sm:$0xff] (!%p1337_p11), %v287_v6  ;;  %304 = vst [vmem:[#allocation2 + $0x38] sm:$0xff] (!%p1337_p11), %v288_v7  ;;  %v290_v9 = vld [vmem:[#allocation6 + $0x48] sm:$0xff] (!%p1337_p11)  ;;  %v291_v10 = vld [vmem:[#allocation6 + $0x50] sm:$0xff] (!%p1337_p11) }
  0x75   : > { %305 = vst [vmem:[#allocation2 + $0x40] sm:$0xff] (!%p1337_p11), %v289_v8  ;;  %v292_v11 = vld [vmem:[#allocation6 + $0x58] sm:$0xff] (!%p1337_p11)  ;;  %306 = vst [vmem:[#allocation2 + $0x48] sm:$0xff] (!%p1337_p11), %v290_v9  ;;  %v293_v12 = vld [vmem:[#allocation6 + $0x60] sm:$0xff] (!%p1337_p11) }
  0x76   : > { %307 = vst [vmem:[#allocation2 + $0x50] sm:$0xff] (!%p1337_p11), %v291_v10  ;;  %308 = vst [vmem:[#allocation2 + $0x58] sm:$0xff] (!%p1337_p11), %v292_v11  ;;  %v294_v13 = vld [vmem:[#allocation6 + $0x68] sm:$0xff] (!%p1337_p11)  ;;  %v295_v14 = vld [vmem:[#allocation6 + $0x70] sm:$0xff] (!%p1337_p11) }
  0x77   : > { %309 = vst [vmem:[#allocation2 + $0x60] sm:$0xff] (!%p1337_p11), %v293_v12  ;;  %310 = vst [vmem:[#allocation2 + $0x68] sm:$0xff] (!%p1337_p11), %v294_v13  ;;  %v296_v15 = vld [vmem:[#allocation6 + $0x78] sm:$0xff] (!%p1337_p11) }
  0x78   : > { %311 = vst [vmem:[#allocation2 + $0x70] sm:$0xff] %v295_v14  ;;  %312 = vst [vmem:[#allocation2 + $0x78] sm:$0xff] %v296_v15 }
  0x79 PF: > { %v337_v16 = vld [vmem:[%s1996_s6] sm:$0xff]  ;;  %v338_v17 = vld [vmem:[%s1996_s6 + $0x8] sm:$0xff]  ;;  %v339_v18 = vld [vmem:[%s1996_s6 + $0x10] sm:$0xff]  ;;  %v1794_v0 = vmov 0   ;;  %s1795_s18 = smov 2   ;;  %s1796_s22 = smov 1  }
  0x7a   : > { %v353_v19 = vpack.c.bf16 %v338_v17, %v337_v16  ;;  %v340_v20 = vld [vmem:[%s1996_s6 + $0x18] sm:$0xff]  ;;  %v341_v22 = vld [vmem:[%s1996_s6 + $0x20] sm:$0xff]  ;;  %v342_v23 = vld [vmem:[%s1996_s6 + $0x28] sm:$0xff]  ;;  %1547 = vset.pattern.permute.xlu1 %v1794_v0  ;;  %1548 = vset.pattern.permute.xlu0 %v1794_v0  ;;  %vm538_vm0 = vcmask 7168   ;;  %s1797_s24 = smov [#allocation12]   ;;  %p1487_p0 = scmp.eq.s32.totalorder %s1854_s21, 1 }
  0x7b   : > { %v354_v21 = vpack.c.bf16 %v340_v20, %v339_v18  ;;  %v355_v24 = vpack.c.bf16 %v342_v23, %v341_v22  ;;  %v313_v25 = vld [vmem:[#allocation2] sm:$0xff]  ;;  %v314_v26 = vld [vmem:[#allocation2 + $0x8] sm:$0xff]  ;;  %v343_v27 = vld [vmem:[%s1996_s6 + $0x30] sm:$0xff]  ;;  %s1227_s30 = sshll.u32 %s1797_s24, 4  ;;  %s1228_s30 = int_to_ptr.vmem [resolvable:$true] %s1227_s30 }
  0x7c   : > { %1393 = vmatprep.subr.bf16.mxu0 %v353_v19  ;;  %v344_v28 = vld [vmem:[%s1996_s6 + $0x38] sm:$0xff]  ;;  %v329_v29 = vpack.c.bf16 %v314_v26, %v313_v25  ;;  %v345_v31 = vld [vmem:[%s1996_s6 + $0x40] sm:$0xff]  ;;  %v346_v32 = vld [vmem:[%s1996_s6 + $0x48] sm:$0xff]  ;;  %s1699_s13 = scalar_lea.vmem %s1228_s30, 2048  ;;  %p1706_p1 = scmp.lt.s32.totalorder %s1228_s30, %s1228_s30 }
  0x7d   : > { %1394 = vmatpush3.bf16.msra.mxu0 %v353_v19  ;;  %v356_v30 = vpack.c.bf16 %v344_v28, %v343_v27  ;;  %v357_v33 = vpack.c.bf16 %v346_v32, %v345_v31  ;;  %v347_v34 = vld [vmem:[%s1996_s6 + $0x50] sm:$0xff]  ;;  %v348_v35 = vld [vmem:[%s1996_s6 + $0x58] sm:$0xff]  ;;  %v349_v37 = vld [vmem:[%s1996_s6 + $0x60] sm:$0xff]  ;;  %p1700_p3 = scmp.ne.s32.totalorder %s1228_s30, %s1699_s13  ;;  %p1707_p2 = scmp.lt.s32.totalorder %s1699_s13, %s1699_s13 }
  0x7e   : > { %1395 = vmatprep.subr.bf16.mxu0 %v354_v21  ;;  %1409 = vmatprep.mubr.bf16.mxu0 %v329_v29  ;;  %v358_v36 = vpack.c.bf16 %v348_v35, %v347_v34  ;;  %v350_v38 = vld [vmem:[%s1996_s6 + $0x68] sm:$0xff]  ;;  %v351_v40 = vld [vmem:[%s1996_s6 + $0x70] sm:$0xff]  ;;  %v352_v41 = vld [vmem:[%s1996_s6 + $0x78] sm:$0xff] }
  0x7f   : > { %v359_v39 = vpack.c.bf16 %v350_v38, %v349_v37  ;;  %v360_v42 = vpack.c.bf16 %v352_v41, %v351_v40  ;;  %v315_v43 = vld [vmem:[#allocation2 + $0x10] sm:$0xff]  ;;  %v316_v44 = vld [vmem:[#allocation2 + $0x18] sm:$0xff]  ;;  %v317_v45 = vld [vmem:[#allocation2 + $0x20] sm:$0xff]  ;;  %p1701_p10 = pnand %p1700_p3, %p1487_p0  ;;  %p1708_p8 = por %p1707_p2, %p1706_p1 }
  0x80   : > { %v318_v46 = vld [vmem:[#allocation2 + $0x28] sm:$0xff]  ;;  %v330_v47 = vpack.c.bf16 %v316_v44, %v315_v43  ;;  %v319_v49 = vld [vmem:[#allocation2 + $0x30] sm:$0xff]  ;;  %v320_v50 = vld [vmem:[#allocation2 + $0x38] sm:$0xff] }
  0x81   : > { %1396 = vmatpush3.bf16.msra.mxu0 %v354_v21  ;;  %v331_v48 = vpack.c.bf16 %v318_v46, %v317_v45  ;;  %v321_v51 = vld [vmem:[#allocation2 + $0x40] sm:$0xff]  ;;  %v322_v52 = vld [vmem:[#allocation2 + $0x48] sm:$0xff]  ;;  %v332_v53 = vpack.c.bf16 %v320_v50, %v319_v49  ;;  %v323_v55 = vld [vmem:[#allocation2 + $0x50] sm:$0xff]  ;;  %p1702_p12 = pneg %p1701_p10 }
  0x82   : > { %1397 = vmatprep.subr.bf16.mxu0 %v355_v24  ;;  %v333_v54 = vpack.c.bf16 %v322_v52, %v321_v51  ;;  %v324_v56 = vld [vmem:[#allocation2 + $0x58] sm:$0xff]  ;;  %v325_v57 = vld [vmem:[#allocation2 + $0x60] sm:$0xff]  ;;  %v326_v58 = vld [vmem:[#allocation2 + $0x68] sm:$0xff] }
  0x83   : > { %v334_v59 = vpack.c.bf16 %v324_v56, %v323_v55  ;;  %v335_v60 = vpack.c.bf16 %v326_v58, %v325_v57  ;;  %v327_v61 = vld [vmem:[#allocation2 + $0x70] sm:$0xff]  ;;  %v328_v62 = vld [vmem:[#allocation2 + $0x78] sm:$0xff]  ;;  %p1709_p13 = pnand %p1708_p8, %p1702_p12 }
  0x84   : > { %v336_v63 = vpack.c.bf16 %v328_v62, %v327_v61 }
  0x85   : > { %1398 = vmatpush3.bf16.msra.mxu0 %v355_v24 }
  0x86   : > { %1399 = vmatprep.subr.bf16.mxu0 %v356_v30 }
  0x89   : > { %1400 = vmatpush3.bf16.msra.mxu0 %v356_v30 }
  0x8a   : > { %1401 = vmatprep.subr.bf16.mxu0 %v357_v33 }
  0x8d   : > { %1402 = vmatpush3.bf16.msra.mxu0 %v357_v33 }
  0x8e   : > { %1403 = vmatprep.subr.bf16.mxu0 %v358_v36 }
  0x91   : > { %1404 = vmatpush3.bf16.msra.mxu0 %v358_v36 }
  0x92   : > { %1405 = vmatprep.subr.bf16.mxu0 %v359_v39 }
  0x95   : > { %1406 = vmatpush3.bf16.msra.mxu0 %v359_v39 }
  0x96   : > { %1407 = vmatprep.subr.bf16.mxu0 %v360_v42 }
  0x99   : > { %1408 = vmatpush3.bf16.msra.mxu0 %v360_v42 }
  0x9c   : > { %1410 = vmatmul.mubr.bf16.vlgmr.msra.gmra.mrb[0].mxu0 %v330_v47 }
  0x9d   : > { %1413 = vmatprep.mubr.bf16.mxu0 %v331_v48 }
  0xa4   : > { %1414 = vmatmul.mubr.bf16.gmra.mrb[4].mxu0 %v332_v53 }
  0xa5   : > { %1417 = vmatprep.mubr.bf16.mxu0 %v333_v54 }
  0xac   : > { %1418 = vmatmul.mubr.bf16.gmra.mrb[8].mxu0 %v334_v59 }
  0xad   : > { %1421 = vmatprep.mubr.bf16.mxu0 %v335_v60 }
  0xb4   : > { %1422 = vmatmul.mubr.bf16.gmra.mrb[12].mxu0 %v336_v63 }
 0x16f   : > { %v1411_v1 = vpop.f32.mrb[0].mxu0 }
 0x170   : > { %559 = vrot.lane.b32.xlu0 %v1411_v1, %s1795_s18  ;;  %494 = vrot.lane.b32.xlu1 %v1411_v1, %s1796_s22  ;;  %v395_v2 = vpop.f32.mrb[1].mxu0 }
 0x171   : > { %v1412_v3 = vpop.f32.mrb[2].mxu0 }
 0x172   : > { %v459_v4 = vpack.c.bf16 %v1412_v3, %v1411_v1  ;;  %v398_v5 = vpop.f32.mrb[3].mxu0 }
 0x173   : > { %v458_v6 = vpack.c.bf16 %v398_v5, %v395_v2 }
 0x174   : > { %555 = vrot.lane.b32.xlu1 %v395_v2, %s1795_s18  ;;  %490 = vrot.lane.b32.xlu0 %v395_v2, %s1796_s22 }
 0x175   : > { %1425 = vmatprep.subr.bf16.mxu1 %v458_v6 }
 0x176   : > { %1426 = vmatpush3.bf16.msra.mxu1 %v458_v6 }
 0x177   : > { %v1415_v7 = vpop.f32.mrb[4].mxu0  ;;  %1427 = vmatprep.subr.bf16.mxu1 %v459_v4 }
 0x178   : > { %561 = vrot.lane.b32.xlu1 %v1412_v3, %s1795_s18  ;;  %496 = vrot.lane.b32.xlu0 %v1412_v3, %s1796_s22  ;;  %v411_v8 = vpop.f32.mrb[5].mxu0 }
 0x179   : > { %v1416_v9 = vpop.f32.mrb[6].mxu0 }
 0x17a   : > { %v461_v10 = vpack.c.bf16 %v1416_v9, %v1415_v7  ;;  %v414_v11 = vpop.f32.mrb[7].mxu0  ;;  %1428 = vmatpush3.bf16.msra.mxu1 %v459_v4 }
 0x17b   : > { %v460_v12 = vpack.c.bf16 %v414_v11, %v411_v8 }
 0x17c   : > { %557 = vrot.lane.b32.xlu1 %v398_v5, %s1795_s18  ;;  %492 = vrot.lane.b32.xlu0 %v398_v5, %s1796_s22 }
 0x17d   : > { %1429 = vmatprep.subr.bf16.mxu1 %v460_v12 }
 0x17e   : > { %1430 = vmatpush3.bf16.msra.mxu1 %v460_v12 }
 0x17f   : > { %1431 = vmatprep.subr.bf16.mxu1 %v461_v10  ;;  %v1419_v13 = vpop.f32.mrb[8].mxu0 }
 0x180   : > { %567 = vrot.lane.b32.xlu0 %v1415_v7, %s1795_s18  ;;  %502 = vrot.lane.b32.xlu1 %v1415_v7, %s1796_s22  ;;  %v427_v14 = vpop.f32.mrb[9].mxu0 }
 0x181   : > { %v1420_v15 = vpop.f32.mrb[10].mxu0 }
 0x182   : > { %1432 = vmatpush3.bf16.msra.mxu1 %v461_v10  ;;  %v463_v16 = vpack.c.bf16 %v1420_v15, %v1419_v13  ;;  %v430_v17 = vpop.f32.mrb[11].mxu0 }
 0x183   : > { %v462_v18 = vpack.c.bf16 %v430_v17, %v427_v14 }
 0x184   : > { %498 = vrot.lane.b32.xlu0 %v411_v8, %s1796_s22  ;;  %569 = vrot.lane.b32.xlu1 %v1416_v9, %s1795_s18 }
 0x185   : > { %1433 = vmatprep.subr.bf16.mxu1 %v462_v18 }
 0x186   : > { %1434 = vmatpush3.bf16.msra.mxu1 %v462_v18 }
 0x187   : > { %1435 = vmatprep.subr.bf16.mxu1 %v463_v16  ;;  %v1423_v19 = vpop.f32.mrb[12].mxu0 }
 0x188   : > { %563 = vrot.lane.b32.xlu0 %v411_v8, %s1795_s18  ;;  %500 = vrot.lane.b32.xlu1 %v414_v11, %s1796_s22  ;;  %v443_v20 = vpop.f32.mrb[13].mxu0 }
 0x189   : > { %v1424_v21 = vpop.f32.mrb[14].mxu0 }
 0x18a   : > { %1436 = vmatpush3.bf16.msra.mxu1 %v463_v16  ;;  %v465_v22 = vpack.c.bf16 %v1424_v21, %v1423_v19  ;;  %v446_v23 = vpop.f32.mrb[15].mxu0 }
 0x18b   : > { %v464_v24 = vpack.c.bf16 %v446_v23, %v443_v20 }
 0x18c   : > { %504 = vrot.lane.b32.xlu0 %v1416_v9, %s1796_s22  ;;  %565 = vrot.lane.b32.xlu1 %v414_v11, %s1795_s18 }
 0x18d   : > { %1437 = vmatprep.subr.bf16.mxu1 %v464_v24 }
 0x18e   : > { %1438 = vmatpush3.bf16.msra.mxu1 %v464_v24 }
 0x18f   : > { %1439 = vmatprep.subr.bf16.mxu1 %v465_v22 }
 0x190   : > { %575 = vrot.lane.b32.xlu0 %v1419_v13, %s1795_s18  ;;  %510 = vrot.lane.b32.xlu1 %v1419_v13, %s1796_s22 }
 0x192   : > { %1440 = vmatpush3.bf16.msra.mxu1 %v465_v22 }
 0x194   : > { %506 = vrot.lane.b32.xlu0 %v427_v14, %s1796_s22  ;;  %577 = vrot.lane.b32.xlu1 %v1420_v15, %s1795_s18 }
 0x198   : > { %571 = vrot.lane.b32.xlu0 %v427_v14, %s1795_s18  ;;  %508 = vrot.lane.b32.xlu1 %v430_v17, %s1796_s22 }
 0x19c   : > { %512 = vrot.lane.b32.xlu0 %v1420_v15, %s1796_s22  ;;  %573 = vrot.lane.b32.xlu1 %v430_v17, %s1795_s18 }
 0x1a0   : > { %583 = vrot.lane.b32.xlu0 %v1423_v19, %s1795_s18  ;;  %518 = vrot.lane.b32.xlu1 %v1423_v19, %s1796_s22 }
 0x1a4   : > { %514 = vrot.lane.b32.xlu0 %v443_v20, %s1796_s22  ;;  %585 = vrot.lane.b32.xlu1 %v1424_v21, %s1795_s18 }
 0x1a8   : > { %516 = vrot.lane.b32.xlu1 %v446_v23, %s1796_s22  ;;  %579 = vrot.lane.b32.xlu0 %v443_v20, %s1795_s18 }
 0x1ac   : > { %520 = vrot.lane.b32.xlu0 %v1424_v21, %s1796_s22  ;;  %581 = vrot.lane.b32.xlu1 %v446_v23, %s1795_s18 }
 0x1e2   : > { %v2059_v25 = vpop.permute.xlu0 %559  ;;  %v495_v26 = vpop.permute.xlu1 %494 }
 0x1e3   : > { %541 = vst.msk [vmem:[#allocation4 + $0x10] sm:$0xff] %vm538_vm0, %v495_v26 }
 0x1e6   : > { %v2062_v27 = vpop.permute.xlu1 %555  ;;  %v491_v28 = vpop.permute.xlu0 %490 }
 0x1e7   : > { %539 = vst.msk [vmem:[#allocation4] sm:$0xff] %vm538_vm0, %v491_v28 }
 0x1ea   : > { %v2065_v29 = vpop.permute.xlu1 %561  ;;  %v497_v30 = vpop.permute.xlu0 %496  ;;  %v676_v31 = vld [vmem:[#allocation4 + $0x10] sm:$0xff] }
 0x1eb   : > { %542 = vst.msk [vmem:[#allocation4 + $0x18] sm:$0xff] %vm538_vm0, %v497_v30  ;;  %703 = vperm.xlu1 %1547, %v676_v31  }
 0x1ee   : > { %v2068_v32 = vpop.permute.xlu1 %557  ;;  %v493_v33 = vpop.permute.xlu0 %492  ;;  %v674_v34 = vld [vmem:[#allocation4] sm:$0xff] }
 0x1ef   : > { %540 = vst.msk [vmem:[#allocation4 + $0x8] sm:$0xff] %vm538_vm0, %v493_v33  ;;  %693 = vperm.xlu0 %1548, %v674_v34  }
 0x1f2   : > { %v2071_v35 = vpop.permute.xlu0 %567  ;;  %v503_v36 = vpop.permute.xlu1 %502  ;;  %v677_v37 = vld [vmem:[#allocation4 + $0x18] sm:$0xff] }
 0x1f3   : > { %545 = vst.msk [vmem:[#allocation4 + $0x30] sm:$0xff] %vm538_vm0, %v503_v36  ;;  %708 = vperm.xlu0 %1548, %v677_v37  }
 0x1f6   : > { %v499_v38 = vpop.permute.xlu0 %498  ;;  %v2074_v39 = vpop.permute.xlu1 %569  ;;  %v675_v40 = vld [vmem:[#allocation4 + $0x8] sm:$0xff] }
 0x1f7   : > { %543 = vst.msk [vmem:[#allocation4 + $0x20] sm:$0xff] %vm538_vm0, %v499_v38  ;;  %698 = vperm.xlu1 %1547, %v675_v40  }
 0x1fa   : > { %v564_v41 = vpop.permute.xlu0 %563  ;;  %v501_v42 = vpop.permute.xlu1 %500  ;;  %v680_v43 = vld [vmem:[#allocation4 + $0x30] sm:$0xff] }
 0x1fb   : > { %544 = vst.msk [vmem:[#allocation4 + $0x28] sm:$0xff] %vm538_vm0, %v501_v42  ;;  %723 = vperm.xlu1 %1547, %v680_v43  }
 0x1fe   : > { %v505_v44 = vpop.permute.xlu0 %504  ;;  %v566_v45 = vpop.permute.xlu1 %565  ;;  %v678_v46 = vld [vmem:[#allocation4 + $0x20] sm:$0xff] }
 0x1ff   : > { %546 = vst.msk [vmem:[#allocation4 + $0x38] sm:$0xff] %vm538_vm0, %v505_v44  ;;  %713 = vperm.xlu1 %1547, %v678_v46  }
 0x202   : > { %v576_v47 = vpop.permute.xlu0 %575  ;;  %v511_v48 = vpop.permute.xlu1 %510  ;;  %v679_v54 = vld [vmem:[#allocation4 + $0x28] sm:$0xff] }
 0x203   : > { %549 = vst.msk [vmem:[#allocation4 + $0x50] sm:$0xff] %vm538_vm0, %v511_v48 }
 0x206   : > { %v507_v49 = vpop.permute.xlu0 %506  ;;  %v578_v50 = vpop.permute.xlu1 %577  ;;  %v681_v51 = vld [vmem:[#allocation4 + $0x38] sm:$0xff] }
 0x207   : > { %547 = vst.msk [vmem:[#allocation4 + $0x40] sm:$0xff] %vm538_vm0, %v507_v49  ;;  %728 = vperm.xlu0 %1548, %v681_v51  }
 0x20a   : > { %v572_v52 = vpop.permute.xlu0 %571  ;;  %v509_v53 = vpop.permute.xlu1 %508  ;;  %v684_v55 = vld [vmem:[#allocation4 + $0x50] sm:$0xff] }
 0x20b   : > { %548 = vst.msk [vmem:[#allocation4 + $0x48] sm:$0xff] %vm538_vm0, %v509_v53  ;;  %718 = vperm.xlu0 %1548, %v679_v54   ;;  %743 = vperm.xlu1 %1547, %v684_v55  }
 0x20e   : > { %v513_v56 = vpop.permute.xlu0 %512  ;;  %v574_v57 = vpop.permute.xlu1 %573  ;;  %v682_v58 = vld [vmem:[#allocation4 + $0x40] sm:$0xff] }
 0x20f   : > { %550 = vst.msk [vmem:[#allocation4 + $0x58] sm:$0xff] %vm538_vm0, %v513_v56  ;;  %733 = vperm.xlu1 %1547, %v682_v58  }
 0x212   : > { %v584_v59 = vpop.permute.xlu0 %583  ;;  %v519_v60 = vpop.permute.xlu1 %518  ;;  %v683_v0 = vld [vmem:[#allocation4 + $0x48] sm:$0xff] }
 0x213   : > { %553 = vst.msk [vmem:[#allocation4 + $0x70] sm:$0xff] %vm538_vm0, %v519_v60 }
 0x216   : > { %v685_v61 = vld [vmem:[#allocation4 + $0x58] sm:$0xff]  ;;  %v515_v62 = vpop.permute.xlu0 %514  ;;  %v586_v63 = vpop.permute.xlu1 %585 }
 0x217   : > { %748 = vperm.xlu0 %1548, %v685_v61   ;;  %551 = vst.msk [vmem:[#allocation4 + $0x60] sm:$0xff] %vm538_vm0, %v515_v62 }
 0x21a   : > { %v517_v1 = vpop.permute.xlu1 %516  ;;  %v580_v2 = vpop.permute.xlu0 %579  ;;  %v688_v6 = vld [vmem:[#allocation4 + $0x70] sm:$0xff] }
 0x21b   : > { %738 = vperm.xlu0 %1548, %v683_v0   ;;  %552 = vst.msk [vmem:[#allocation4 + $0x68] sm:$0xff] %vm538_vm0, %v517_v1 }
 0x21e   : > { %v686_v3 = vld [vmem:[#allocation4 + $0x60] sm:$0xff]  ;;  %v521_v4 = vpop.permute.xlu0 %520  ;;  %v582_v8 = vpop.permute.xlu1 %581 }
 0x21f   : > { %753 = vperm.xlu0 %1548, %v686_v3   ;;  %554 = vst.msk [vmem:[#allocation4 + $0x78] sm:$0xff] %vm538_vm0, %v521_v4 }
 0x222   : > { %v687_v5 = vld [vmem:[#allocation4 + $0x68] sm:$0xff] }
 0x223   : > { %758 = vperm.xlu0 %1548, %v687_v5  }
 0x226   : > { %v689_v7 = vld [vmem:[#allocation4 + $0x78] sm:$0xff] }
 0x227   : > { %763 = vperm.xlu0 %1548, %v688_v6  }
 0x22b   : > { %768 = vperm.xlu0 %1548, %v689_v7  }
 0x238   : > { %603 = vxpose.xlu1.b32.start [1/16] (narrow) %v2062_v27, 8 }
 0x23c   : > { %604 = vxpose.xlu1.b32.cont [2/16] (narrow) %v2068_v32, 8 }
 0x240   : > { %605 = vxpose.xlu1.b32.cont [3/16] (narrow) %v2059_v25, 8 }
 0x244   : > { %606 = vxpose.xlu1.b32.cont [4/16] (narrow) %v2065_v29, 8 }
 0x248   : > { %607 = vxpose.xlu1.b32.cont [5/16] (narrow) %v564_v41, 8 }
 0x24c   : > { %608 = vxpose.xlu1.b32.cont [6/16] (narrow) %v566_v45, 8 }
 0x250   : > { %609 = vxpose.xlu1.b32.cont [7/16] (narrow) %v2071_v35, 8 }
 0x254   : > { %610 = vxpose.xlu1.b32.cont [8/16] (narrow) %v2074_v39, 8 }
 0x258   : > { %611 = vxpose.xlu1.b32.cont [9/16] (narrow) %v572_v52, 8 }
 0x25c   : > { %612 = vxpose.xlu1.b32.cont [10/16] (narrow) %v574_v57, 8 }
 0x260   : > { %613 = vxpose.xlu1.b32.cont [11/16] (narrow) %v576_v47, 8 }
 0x264   : > { %614 = vxpose.xlu1.b32.cont [12/16] (narrow) %v578_v50, 8 }
 0x268   : > { %615 = vxpose.xlu1.b32.cont [13/16] (narrow) %v580_v2, 8 }
 0x26a   : > { %v704_v10 = vpop.permute.xlu1 %703 }
 0x26c   : > { %616 = vxpose.xlu1.b32.cont [14/16] (narrow) %v582_v8, 8 }
 0x26e   : > { %v694_v9 = vpop.permute.xlu0 %693 }
 0x270   : > { %617 = vxpose.xlu1.b32.cont [15/16] (narrow) %v584_v59, 8 }
 0x272   : > { %v709_v11 = vpop.permute.xlu0 %708 }
 0x274   : > { %618 = vxpose.xlu1.b32.end [16/16] (narrow) %v586_v63, 8 }
 0x276   : > { %v699_v12 = vpop.permute.xlu1 %698 }
 0x27a   : > { %v724_v14 = vpop.permute.xlu1 %723 }
 0x27e   : > { %v714_v16 = vpop.permute.xlu1 %713 }
 0x286   : > { %v729_v13 = vpop.permute.xlu0 %728 }
 0x28a   : > { %v719_v15 = vpop.permute.xlu0 %718  ;;  %v744_v18 = vpop.permute.xlu1 %743 }
 0x28e   : > { %v734_v20 = vpop.permute.xlu1 %733 }
 0x296   : > { %v749_v17 = vpop.permute.xlu0 %748 }
 0x29a   : > { %v2093_v19 = vpop.permute.xlu0 %738 }
 0x29e   : > { %v2095_v21 = vpop.permute.xlu0 %753 }
 0x2a2   : > { %v2097_v23 = vpop.permute.xlu0 %758 }
 0x2a6   : > { %v764_v25 = vpop.permute.xlu0 %763 }
 0x2aa   : > { %v769_v4 = vpop.permute.xlu0 %768 }
 0x2b8   : > { %v619_v22 = vpop.trf.xlu1 }
 0x2b9   : > { %635 = vst [vmem:[#allocation5] sm:$0x1] %v619_v22 }
 0x2c0   : > { %v2099_v24 = vld [vmem:[#allocation5] ss:$0 sm:$0xff] }
 0x2c1   : > { %v791_v26 = vadd.f32 %v2099_v24, %v764_v25  ;;  %v777_v27 = vadd.f32 %v2099_v24, %v694_v9  ;;  %v779_v28 = vadd.f32 %v2099_v24, %v704_v10  ;;  %v780_v34 = vadd.f32 %v2099_v24, %v709_v11 }
 0x2c2   : > { %v778_v37 = vadd.f32 %v2099_v24, %v699_v12  ;;  %v783_v40 = vadd.f32 %v2099_v24, %v724_v14  ;;  %v781_v43 = vadd.f32 %v2099_v24, %v714_v16  ;;  %v784_v46 = vadd.f32 %v2099_v24, %v729_v13  ;;  %v637_v16 = vld [vmem:[#allocation9] sm:$0xff] }
 0x2c3   : > { %vm807_vm1 = vcmp.ge.f32.partialorder %v791_v26, 0.0  ;;  %v823_v29 = vmul.f32 0.2, %v791_v26  ;;  %vm793_vm2 = vcmp.ge.f32.partialorder %v777_v27, 0.0  ;;  %v809_v30 = vmul.f32 0.2, %v777_v27 }
 0x2c4   : > { %v811_v33 = vmul.f32 0.2, %v779_v28  ;;  %vm795_vm3 = vcmp.ge.f32.partialorder %v779_v28, 0.0  ;;  %v812_v36 = vmul.f32 0.2, %v780_v34  ;;  %vm796_vm4 = vcmp.ge.f32.partialorder %v780_v34, 0.0 }
 0x2c5   : > { %v2104_v31 = vsel %vm807_vm1, %v791_v26, %v823_v29  ;;  %v2106_v32 = vsel %vm793_vm2, %v777_v27, %v809_v30  ;;  %v810_v39 = vmul.f32 0.2, %v778_v37  ;;  %vm794_vm5 = vcmp.ge.f32.partialorder %v778_v37, 0.0 }
 0x2c6   : > { %869 = vmax.xlane.f32.xlu1 %v2104_v31  ;;  %841 = vmax.xlane.f32.xlu0 %v2106_v32  ;;  %v2111_v35 = vsel %vm795_vm3, %v779_v28, %v811_v33  ;;  %v2115_v38 = vsel %vm796_vm4, %v780_v34, %v812_v36  ;;  %v815_v42 = vmul.f32 0.2, %v783_v40  ;;  %vm799_vm6 = vcmp.ge.f32.partialorder %v783_v40, 0.0 }
 0x2c7   : > { %v2119_v41 = vsel %vm794_vm5, %v778_v37, %v810_v39  ;;  %v813_v45 = vmul.f32 0.2, %v781_v43  ;;  %vm797_vm7 = vcmp.ge.f32.partialorder %v781_v43, 0.0  ;;  %v816_v48 = vmul.f32 0.2, %v784_v46 }
 0x2c8   : > { %v2123_v44 = vsel %vm799_vm6, %v783_v40, %v815_v42  ;;  %v782_v49 = vadd.f32 %v2099_v24, %v719_v15  ;;  %vm800_vm8 = vcmp.ge.f32.partialorder %v784_v46, 0.0  ;;  %v787_v52 = vadd.f32 %v2099_v24, %v744_v18 }
 0x2c9   : > { %v2127_v47 = vsel %vm797_vm7, %v781_v43, %v813_v45  ;;  %v2131_v50 = vsel %vm800_vm8, %v784_v46, %v816_v48  ;;  %v785_v55 = vadd.f32 %v2099_v24, %v734_v20  ;;  %v788_v58 = vadd.f32 %v2099_v24, %v749_v17 }
 0x2ca   : > { %845 = vmax.xlane.f32.xlu0 %v2111_v35  ;;  %v814_v51 = vmul.f32 0.2, %v782_v49  ;;  %vm798_vm9 = vcmp.ge.f32.partialorder %v782_v49, 0.0  ;;  %v819_v54 = vmul.f32 0.2, %v787_v52  ;;  %vm803_vm10 = vcmp.ge.f32.partialorder %v787_v52, 0.0 }
 0x2cb   : > { %v817_v57 = vmul.f32 0.2, %v785_v55  ;;  %vm801_vm11 = vcmp.ge.f32.partialorder %v785_v55, 0.0  ;;  %v820_v60 = vmul.f32 0.2, %v788_v58  ;;  %v786_v61 = vadd.f32 %v2099_v24, %v2093_v19 }
 0x2cc   : > { %v2135_v53 = vsel %vm798_vm9, %v782_v49, %v814_v51  ;;  %v2139_v56 = vsel %vm803_vm10, %v787_v52, %v819_v54  ;;  %vm804_vm12 = vcmp.ge.f32.partialorder %v788_v58, 0.0  ;;  %v789_v0 = vadd.f32 %v2099_v24, %v2095_v21 }
 0x2cd   : > { %v2143_v59 = vsel %vm801_vm11, %v785_v55, %v817_v57  ;;  %v2148_v62 = vsel %vm804_vm12, %v788_v58, %v820_v60  ;;  %v818_v63 = vmul.f32 0.2, %v786_v61  ;;  %vm802_vm13 = vcmp.ge.f32.partialorder %v786_v61, 0.0 }
 0x2ce   : > { %847 = vmax.xlane.f32.xlu0 %v2115_v38  ;;  %v821_v2 = vmul.f32 0.2, %v789_v0  ;;  %v790_v3 = vadd.f32 %v2099_v24, %v2097_v23  ;;  %vm805_vm14 = vcmp.ge.f32.partialorder %v789_v0, 0.0  ;;  %v792_v5 = vadd.f32 %v2099_v24, %v769_v4 }
 0x2cf   : > { %v2153_v1 = vsel %vm802_vm13, %v786_v61, %v818_v63  ;;  %v641_v20 = vunpack.c.0.s8 %v637_v16  ;;  %v643_v23 = vunpack.c.2.s8 %v637_v16  ;;  %v644_v30 = vunpack.c.3.s8 %v637_v16 }
 0x2d0   : > { %v2159_v6 = vsel %vm805_vm14, %v789_v0, %v821_v2  ;;  %v822_v7 = vmul.f32 0.2, %v790_v3  ;;  %vm806_vm15 = vcmp.ge.f32.partialorder %v790_v3, 0.0  ;;  %v824_v9 = vmul.f32 0.2, %v792_v5 }
 0x2d1   : > { %vm808_vm0 = vcmp.ge.f32.partialorder %v792_v5, 0.0  ;;  %v657_v25 = vcvt.s32.f32 %v641_v20  ;;  %v659_v29 = vcvt.s32.f32 %v643_v23  ;;  %v642_v39 = vunpack.c.1.s8 %v637_v16 }
 0x2d2   : > { %843 = vmax.xlane.f32.xlu0 %v2119_v41  ;;  %v2162_v8 = vsel %vm806_vm15, %v790_v3, %v822_v7  ;;  %v2165_v10 = vsel %vm808_vm0, %v792_v5, %v824_v9 }
 0x2d3   : > { %v658_v48 = vcvt.s32.f32 %v642_v39 }
 0x2d6   : > { %853 = vmax.xlane.f32.xlu0 %v2123_v44 }
 0x2da   : > { %849 = vmax.xlane.f32.xlu0 %v2127_v47 }
 0x2de   : > { %855 = vmax.xlane.f32.xlu0 %v2131_v50 }
 0x2e2   : > { %851 = vmax.xlane.f32.xlu0 %v2135_v53 }
 0x2e6   : > { %861 = vmax.xlane.f32.xlu0 %v2139_v56 }
 0x2ea   : > { %857 = vmax.xlane.f32.xlu0 %v2143_v59 }
 0x2ee   : > { %863 = vmax.xlane.f32.xlu0 %v2148_v62 }
 0x2f2   : > { %859 = vmax.xlane.f32.xlu0 %v2153_v1 }
 0x2f6   : > { %865 = vmax.xlane.f32.xlu0 %v2159_v6 }
 0x2fa   : > { %867 = vmax.xlane.f32.xlu0 %v2162_v8 }
 0x2fe   : > { %871 = vmax.xlane.f32.xlu0 %v2165_v10 }
 0x353   : > { %v842_v11 = vpop.xlane.xlu0 %841 }
 0x354   : > { %v873_v12 = vsub.f32 %v2106_v32, %v842_v11 }
 0x356   : > { %v889_v13 = vmul.f32 1.442695, %v873_v12 }
 0x357   : > { %v846_v14 = vpop.xlane.xlu0 %845 }
 0x358   : > { %v875_v15 = vsub.f32 %v2111_v35, %v846_v14  ;;  %1549 = vpow2.f32 %v889_v13 }
 0x35a   : > { %v893_v17 = vmul.f32 1.442695, %v875_v15  ;;  %v639_v15 = vld [vmem:[#allocation9 + $0x10] sm:$0xff] }
 0x35b   : > { %v848_v18 = vpop.xlane.xlu0 %847 }
 0x35c   : > { %1551 = vpow2.f32 %v893_v17  ;;  %v876_v19 = vsub.f32 %v2115_v38, %v848_v18  ;;  %v660_v38 = vcvt.s32.f32 %v644_v30 }
 0x35e   : > { %v895_v21 = vmul.f32 1.442695, %v876_v19 }
 0x35f   : > { %v844_v22 = vpop.xlane.xlu0 %843 }
 0x360   : > { %1553 = vpow2.f32 %v895_v21  ;;  %v874_v24 = vsub.f32 %v2119_v41, %v844_v22  ;;  %v638_v41 = vld [vmem:[#allocation9 + $0x8] sm:$0xff]  ;;  %v651_v21 = vunpack.c.2.s8 %v639_v15 }
 0x361   : > { %v647_v49 = vunpack.c.2.s8 %v638_v41  ;;  %v645_v58 = vunpack.c.0.s8 %v638_v41  ;;  %v646_v13 = vunpack.c.1.s8 %v638_v41 }
 0x362   : > { %v891_v26 = vmul.f32 1.442695, %v874_v24  ;;  %v1550_v27 = vpop.eup %1549  ;;  %v870_v24 = vpop.xlane.xlu1 %869 }
 0x363   : > { %v854_v28 = vpop.xlane.xlu0 %853  ;;  %v921_v33 = vmul.f32 %v1550_v27, %v657_v25  ;;  %v663_v57 = vcvt.s32.f32 %v647_v49  ;;  %v661_v4 = vcvt.s32.f32 %v645_v58  ;;  %v662_v20 = vcvt.s32.f32 %v646_v13  ;;  %v640_v49 = vld [vmem:[#allocation9 + $0x18] sm:$0xff] }
 0x364   : > { %1555 = vpow2.f32 %v891_v26  ;;  %v879_v32 = vsub.f32 %v2123_v44, %v854_v28  ;;  %v667_v27 = vcvt.s32.f32 %v651_v21  ;;  %v649_v28 = vunpack.c.0.s8 %v639_v15 }
 0x365   : > { %937 = vadd.xlane.f32.xlu0 %v921_v33 }
 0x366   : > { %v1552_v34 = vpop.eup %1551  ;;  %v901_v35 = vmul.f32 1.442695, %v879_v32  ;;  %v887_v32 = vsub.f32 %v2104_v31, %v870_v24  ;;  %v650_v31 = vunpack.c.1.s8 %v639_v15 }
 0x367   : > { %v850_v36 = vpop.xlane.xlu0 %849  ;;  %v923_v37 = vmul.f32 %v1552_v34, %v659_v29 }
 0x368   : > { %1557 = vpow2.f32 %v901_v35  ;;  %v877_v40 = vsub.f32 %v2127_v47, %v850_v36  ;;  %v665_v36 = vcvt.s32.f32 %v649_v28 }
 0x369   : > { %941 = vadd.xlane.f32.xlu0 %v923_v37 }
 0x36a   : > { %v1554_v42 = vpop.eup %1553  ;;  %v897_v43 = vmul.f32 1.442695, %v877_v40  ;;  %v917_v40 = vmul.f32 1.442695, %v887_v32 }
 0x36b   : > { %v856_v45 = vpop.xlane.xlu0 %855  ;;  %v924_v46 = vmul.f32 %v1554_v42, %v660_v38 }
 0x36c   : > { %1559 = vpow2.f32 %v897_v43  ;;  %v880_v44 = vsub.f32 %v2131_v50, %v856_v45  ;;  %v648_v50 = vunpack.c.3.s8 %v638_v41 }
 0x36d   : > { %943 = vadd.xlane.f32.xlu0 %v924_v46  ;;  %v986_v63 = vpack.c.bf16 %v924_v46, %v923_v37  ;;  %v652_v37 = vunpack.c.3.s8 %v639_v15 }
 0x36e   : > { %v1556_v51 = vpop.eup %1555  ;;  %v903_v52 = vmul.f32 1.442695, %v880_v44 }
 0x36f   : > { %v852_v54 = vpop.xlane.xlu0 %851  ;;  %v922_v55 = vmul.f32 %v1556_v51, %v658_v48  ;;  %v668_v43 = vcvt.s32.f32 %v652_v37 }
 0x370   : > { %1561 = vpow2.f32 %v903_v52  ;;  %v878_v47 = vsub.f32 %v2135_v53, %v852_v54  ;;  %v664_v53 = vcvt.s32.f32 %v648_v50  ;;  %v653_v52 = vunpack.c.0.s8 %v640_v49 }
 0x371   : > { %v985_v60 = vpack.c.bf16 %v922_v55, %v921_v33  ;;  %939 = vadd.xlane.f32.xlu0 %v922_v55  ;;  %v656_v50 = vunpack.c.3.s8 %v640_v49 }
 0x372   : > { %v1558_v61 = vpop.eup %1557  ;;  %v899_v0 = vmul.f32 1.442695, %v878_v47  ;;  %v669_v47 = vcvt.s32.f32 %v653_v52 }
 0x373   : > { %1441 = vmatprep.mubr.bf16.mxu1 %v985_v60  ;;  %v862_v2 = vpop.xlane.xlu0 %861  ;;  %v927_v3 = vmul.f32 %v1558_v61, %v663_v57  ;;  %v655_v60 = vunpack.c.2.s8 %v640_v49  ;;  %v654_v61 = vunpack.c.1.s8 %v640_v49 }
 0x374   : > { %1563 = vpow2.f32 %v899_v0  ;;  %v883_v5 = vsub.f32 %v2139_v56, %v862_v2  ;;  %1442 = vmatmul.mubr.bf16.vlgmr.msra.gmra.mrb[0].mxu1 %v986_v63 }
 0x375   : > { %949 = vadd.xlane.f32.xlu0 %v927_v3 }
 0x376   : > { %v1560_v7 = vpop.eup %1559  ;;  %v909_v9 = vmul.f32 1.442695, %v883_v5 }
 0x377   : > { %v858_v11 = vpop.xlane.xlu0 %857  ;;  %v925_v12 = vmul.f32 %v1560_v7, %v661_v4  ;;  %v670_v4 = vcvt.s32.f32 %v654_v61 }
 0x378   : > { %1565 = vpow2.f32 %v909_v9  ;;  %v881_v14 = vsub.f32 %v2143_v59, %v858_v11  ;;  %v672_v11 = vcvt.s32.f32 %v656_v50 }
 0x379   : > { %945 = vadd.xlane.f32.xlu0 %v925_v12 }
 0x37a   : > { %v1562_v16 = vpop.eup %1561  ;;  %v905_v17 = vmul.f32 1.442695, %v881_v14 }
 0x37b   : > { %v864_v18 = vpop.xlane.xlu0 %863  ;;  %v928_v19 = vmul.f32 %v1562_v16, %v664_v53 }
 0x37c   : > { %1567 = vpow2.f32 %v905_v17  ;;  %v884_v56 = vsub.f32 %v2148_v62, %v864_v18 }
 0x37d   : > { %951 = vadd.xlane.f32.xlu0 %v928_v19  ;;  %v988_v33 = vpack.c.bf16 %v928_v19, %v927_v3  ;;  %v671_v3 = vcvt.s32.f32 %v655_v60 }
 0x37e   : > { %v1564_v22 = vpop.eup %1563  ;;  %v911_v23 = vmul.f32 1.442695, %v884_v56 }
 0x37f   : > { %v860_v25 = vpop.xlane.xlu0 %859  ;;  %v926_v26 = vmul.f32 %v1564_v22, %v662_v20 }
 0x380   : > { %1569 = vpow2.f32 %v911_v23  ;;  %v882_v59 = vsub.f32 %v2153_v1, %v860_v25 }
 0x381   : > { %v987_v29 = vpack.c.bf16 %v926_v26, %v925_v12  ;;  %947 = vadd.xlane.f32.xlu0 %v926_v26 }
 0x382   : > { %v1566_v30 = vpop.eup %1565  ;;  %v907_v34 = vmul.f32 1.442695, %v882_v59 }
 0x383   : > { %v866_v35 = vpop.xlane.xlu0 %865  ;;  %1445 = vmatprep.mubr.bf16.mxu1 %v987_v29  ;;  %v931_v62 = vmul.f32 %v1566_v30, %v667_v27  ;;  %v2189_v27 = vld [vmem:[%s270_s26] ss:$0 sm:$0xff] }
 0x384   : > { %1571 = vpow2.f32 %v907_v34  ;;  %v885_v38 = vsub.f32 %v2159_v6, %v866_v35  ;;  %1446 = vmatmul.mubr.bf16.gmra.mrb[4].mxu1 %v988_v33  ;;  %v666_v6 = vcvt.s32.f32 %v650_v31 }
 0x385   : > { %957 = vadd.xlane.f32.xlu0 %v931_v62 }
 0x386   : > { %v1568_v39 = vpop.eup %1567  ;;  %v913_v41 = vmul.f32 1.442695, %v885_v38 }
 0x387   : > { %v868_v1 = vpop.xlane.xlu0 %867  ;;  %v929_v42 = vmul.f32 %v1568_v39, %v665_v36 }
 0x388   : > { %1573 = vpow2.f32 %v913_v41  ;;  %v886_v45 = vsub.f32 %v2162_v8, %v868_v1 }
 0x389   : > { %1575 = vpow2.f32 %v917_v40  ;;  %953 = vadd.xlane.f32.xlu0 %v929_v42 }
 0x38a   : > { %v1570_v46 = vpop.eup %1569  ;;  %v915_v48 = vmul.f32 1.442695, %v886_v45 }
 0x38b   : > { %v872_v44 = vpop.xlane.xlu0 %871  ;;  %v932_v51 = vmul.f32 %v1570_v46, %v668_v43 }
 0x38c   : > { %1577 = vpow2.f32 %v915_v48  ;;  %v888_v54 = vsub.f32 %v2165_v10, %v872_v44 }
 0x38d   : > { %959 = vadd.xlane.f32.xlu1 %v932_v51  ;;  %v990_v0 = vpack.c.bf16 %v932_v51, %v931_v62 }
 0x38e   : > { %v1572_v55 = vpop.eup %1571  ;;  %v919_v57 = vmul.f32 1.442695, %v888_v54 }
 0x38f   : > { %v930_v58 = vmul.f32 %v1572_v55, %v666_v6 }
 0x390   : > { %1579 = vpow2.f32 %v919_v57 }
 0x391   : > { %955 = vadd.xlane.f32.xlu1 %v930_v58  ;;  %v989_v8 = vpack.c.bf16 %v930_v58, %v929_v42 }
 0x392   : > { %v1574_v63 = vpop.eup %1573 }
 0x393   : > { %1449 = vmatprep.mubr.bf16.mxu1 %v989_v8  ;;  %v933_v2 = vmul.f32 %v1574_v63, %v669_v47  ;;  %v1576_v5 = vpop.eup %1575 }
 0x394   : > { %1450 = vmatmul.mubr.bf16.gmra.mrb[8].mxu1 %v990_v0  ;;  %v935_v7 = vmul.f32 %v1576_v5, %v671_v3 }
 0x395   : > { %961 = vadd.xlane.f32.xlu0 %v933_v2 }
 0x396   : > { %v1578_v10 = vpop.eup %1577 }
 0x397   : > { %v934_v9 = vmul.f32 %v1578_v10, %v670_v4 }
 0x399   : > { %965 = vadd.xlane.f32.xlu0 %v935_v7  ;;  %963 = vadd.xlane.f32.xlu1 %v934_v9  ;;  %v991_v12 = vpack.c.bf16 %v934_v9, %v933_v2 }
 0x39a   : > { %v1580_v53 = vpop.eup %1579 }
 0x39b   : > { %1453 = vmatprep.mubr.bf16.mxu1 %v991_v12  ;;  %v936_v13 = vmul.f32 %v1580_v53, %v672_v11 }
 0x39d   : > { %967 = vadd.xlane.f32.xlu1 %v936_v13  ;;  %v992_v14 = vpack.c.bf16 %v936_v13, %v935_v7 }
 0x39f   : > { %1454 = vmatmul.mubr.bf16.gmra.mrb[12].mxu1 %v992_v14 }
 0x3f2   : > { %v938_v15 = vpop.xlane.xlu0 %937 }
 0x3f3   : > { %v969_v21 = vmax.f32 %v938_v15, 1e-30 }
 0x3f6   : > { %v942_v16 = vpop.xlane.xlu0 %941 }
 0x3f7   : > { %v971_v20 = vmax.f32 %v942_v16, 1e-30 }
 0x3f9   : > { %1581 = vrcp.f32 %v971_v20 }
 0x3fa   : > { %v944_v17 = vpop.xlane.xlu0 %943  ;;  %1583 = vrcp.f32 %v969_v21 }
 0x3fb   : > { %v972_v56 = vmax.f32 %v944_v17, 1e-30 }
 0x3fd   : > { %1585 = vrcp.f32 %v972_v56 }
 0x3fe   : > { %v940_v18 = vpop.xlane.xlu0 %939 }
 0x3ff   : > { %v970_v22 = vmax.f32 %v940_v18, 1e-30 }
 0x401   : > { %1587 = vrcp.f32 %v970_v22 }
 0x402   : > { %v950_v19 = vpop.xlane.xlu0 %949 }
 0x403   : > { %v1582_v25 = vpop.eup %1581  ;;  %v975_v32 = vmax.f32 %v950_v19, 1e-30 }
 0x404   : > { %v1584_v28 = vpop.eup %1583 }
 0x405   : > { %1589 = vrcp.f32 %v975_v32 }
 0x406   : > { %v946_v23 = vpop.xlane.xlu0 %945 }
 0x407   : > { %v1586_v30 = vpop.eup %1585  ;;  %v973_v36 = vmax.f32 %v946_v23, 1e-30 }
 0x409   : > { %1591 = vrcp.f32 %v973_v36 }
 0x40a   : > { %v952_v24 = vpop.xlane.xlu0 %951 }
 0x40b   : > { %v1588_v62 = vpop.eup %1587  ;;  %v976_v40 = vmax.f32 %v952_v24, 1e-30 }
 0x40d   : > { %1593 = vrcp.f32 %v976_v40 }
 0x40e   : > { %v948_v33 = vpop.xlane.xlu0 %947 }
 0x40f   : > { %v974_v42 = vmax.f32 %v948_v33, 1e-30  ;;  %v1590_v6 = vpop.eup %1589 }
 0x411   : > { %1595 = vrcp.f32 %v974_v42 }
 0x412   : > { %v958_v44 = vpop.xlane.xlu0 %957 }
 0x413   : > { %v1592_v55 = vpop.eup %1591  ;;  %v979_v60 = vmax.f32 %v958_v44, 1e-30 }
 0x415   : > { %1597 = vrcp.f32 %v979_v60 }
 0x416   : > { %v954_v52 = vpop.xlane.xlu0 %953 }
 0x417   : > { %v1594_v47 = vpop.eup %1593  ;;  %v977_v2 = vmax.f32 %v954_v52, 1e-30 }
 0x419   : > { %1599 = vrcp.f32 %v977_v2 }
 0x41a   : > { %v960_v51 = vpop.xlane.xlu1 %959 }
 0x41b   : > { %v1596_v0 = vpop.eup %1595  ;;  %v980_v5 = vmax.f32 %v960_v51, 1e-30 }
 0x41d   : > { %1601 = vrcp.f32 %v980_v5 }
 0x41e   : > { %v956_v61 = vpop.xlane.xlu1 %955 }
 0x41f   : > { %v978_v11 = vmax.f32 %v956_v61, 1e-30  ;;  %v1598_v22 = vpop.eup %1597 }
 0x421   : > { %1603 = vrcp.f32 %v978_v11 }
 0x422   : > { %v962_v10 = vpop.xlane.xlu0 %961 }
 0x423   : > { %v981_v21 = vmax.f32 %v962_v10, 1e-30 }
 0x426   : > { %v964_v13 = vpop.xlane.xlu1 %963  ;;  %v966_v18 = vpop.xlane.xlu0 %965 }
 0x427   : > { %v983_v20 = vmax.f32 %v966_v18, 1e-30  ;;  %v982_v23 = vmax.f32 %v964_v13, 1e-30 }
 0x429   : > { %1605 = vrcp.f32 %v983_v20 }
 0x42a   : > { %v968_v19 = vpop.xlane.xlu1 %967  ;;  %1607 = vrcp.f32 %v981_v21 }
 0x42b   : > { %v984_v56 = vmax.f32 %v968_v19, 1e-30 }
 0x42d   : > { %1609 = vrcp.f32 %v984_v56 }
 0x42e   : > { %1611 = vrcp.f32 %v982_v23 }
 0x447   : > { %v1443_v26 = vpop.f32.mrb[0].mxu1 }
 0x448   : > { %v1116_v59 = vmul.f32 %v1582_v25, %v1443_v26  ;;  %v1035_v29 = vpop.f32.mrb[1].mxu1  ;;  %v1600_v25 = vpop.eup %1599 }
 0x449   : > { %v1114_v34 = vmul.f32 %v1584_v28, %v1035_v29  ;;  %v1444_v35 = vpop.f32.mrb[2].mxu1 }
 0x44a   : > { %v1139_v37 = vadd.f32 %v2189_v27, %v1116_v59  ;;  %v1117_v38 = vmul.f32 %v1586_v30, %v1444_v35  ;;  %v1038_v39 = vpop.f32.mrb[3].mxu1  ;;  %v1602_v59 = vpop.eup %1601 }
 0x44b   : > { %v1137_v41 = vadd.f32 %v2189_v27, %v1114_v34  ;;  %v1115_v1 = vmul.f32 %v1588_v62, %v1038_v39  ;;  %v1604_v32 = vpop.eup %1603 }
 0x44c   : > { %v1342_v43 = vclamps-f32 %v1139_v37, 1.0  ;;  %v1140_v31 = vadd.f32 %v2189_v27, %v1117_v38  ;;  %v1606_v42 = vpop.eup %1605 }
 0x44d   : > { %v1340_v45 = vclamps-f32 %v1137_v41, 1.0  ;;  %v1138_v46 = vadd.f32 %v2189_v27, %v1115_v1 }
 0x44e   : > { %1188 = vst [vmem:[#allocation2 + $0x10] sm:$0xff] %v1342_v43  ;;  %1204 = vst [vmem:[#allocation12 + $0x10] sm:$0xff] %v1342_v43  ;;  %v1343_v48 = vclamps-f32 %v1140_v31, 1.0  ;;  %v1608_v31 = vpop.eup %1607 }
 0x44f   : > { %1186 = vst [vmem:[#allocation2] sm:$0xff] %v1340_v45  ;;  %1202 = vst [vmem:[#allocation12] sm:$0xff] %v1340_v45  ;;  %v1341_v49 = vclamps-f32 %v1138_v46, 1.0 }
 0x450   : > { %1189 = vst [vmem:[#allocation2 + $0x18] sm:$0xff] %v1343_v48  ;;  %1205 = vst [vmem:[#allocation12 + $0x18] sm:$0xff] %v1343_v48  ;;  %v1610_v48 = vpop.eup %1609 }
 0x451   : > { %1187 = vst [vmem:[#allocation2 + $0x8] sm:$0xff] %v1341_v49  ;;  %1203 = vst [vmem:[#allocation12 + $0x8] sm:$0xff] %v1341_v49  ;;  %v1612_v51 = vpop.eup %1611 }
 0x457   : > { %v1447_v54 = vpop.f32.mrb[4].mxu1 }
 0x458   : > { %v1120_v57 = vmul.f32 %v1590_v6, %v1447_v54  ;;  %v1051_v58 = vpop.f32.mrb[5].mxu1 }
 0x459   : > { %v1118_v8 = vmul.f32 %v1592_v55, %v1051_v58  ;;  %v1448_v63 = vpop.f32.mrb[6].mxu1 }
 0x45a   : > { %v1143_v3 = vadd.f32 %v2189_v27, %v1120_v57  ;;  %v1121_v4 = vmul.f32 %v1594_v47, %v1448_v63  ;;  %v1054_v50 = vpop.f32.mrb[7].mxu1 }
 0x45b   : > { %v1141_v7 = vadd.f32 %v2189_v27, %v1118_v8  ;;  %v1119_v9 = vmul.f32 %v1596_v0, %v1054_v50 }
 0x45c   : > { %v1346_v12 = vclamps-f32 %v1143_v3, 1.0  ;;  %v1144_v53 = vadd.f32 %v2189_v27, %v1121_v4 }
 0x45d   : > { %v1344_v14 = vclamps-f32 %v1141_v7, 1.0  ;;  %v1142_v15 = vadd.f32 %v2189_v27, %v1119_v9 }
 0x45e   : > { %1192 = vst [vmem:[#allocation2 + $0x30] sm:$0xff] %v1346_v12  ;;  %1208 = vst [vmem:[#allocation12 + $0x30] sm:$0xff] %v1346_v12  ;;  %v1347_v16 = vclamps-f32 %v1144_v53, 1.0 }
 0x45f   : > { %1190 = vst [vmem:[#allocation2 + $0x20] sm:$0xff] %v1344_v14  ;;  %1206 = vst [vmem:[#allocation12 + $0x20] sm:$0xff] %v1344_v14  ;;  %v1345_v17 = vclamps-f32 %v1142_v15, 1.0 }
 0x460   : > { %1193 = vst [vmem:[#allocation2 + $0x38] sm:$0xff] %v1347_v16  ;;  %1209 = vst [vmem:[#allocation12 + $0x38] sm:$0xff] %v1347_v16 }
 0x461   : > { %1191 = vst [vmem:[#allocation2 + $0x28] sm:$0xff] %v1345_v17  ;;  %1207 = vst [vmem:[#allocation12 + $0x28] sm:$0xff] %v1345_v17 }
 0x467   : > { %v1451_v24 = vpop.f32.mrb[8].mxu1 }
 0x468   : > { %v1124_v26 = vmul.f32 %v1598_v22, %v1451_v24  ;;  %v1067_v28 = vpop.f32.mrb[9].mxu1 }
 0x469   : > { %v1122_v29 = vmul.f32 %v1600_v25, %v1067_v28  ;;  %v1452_v30 = vpop.f32.mrb[10].mxu1 }
 0x46a   : > { %v1147_v33 = vadd.f32 %v2189_v27, %v1124_v26  ;;  %v1125_v34 = vmul.f32 %v1602_v59, %v1452_v30  ;;  %v1070_v35 = vpop.f32.mrb[11].mxu1 }
 0x46b   : > { %v1145_v62 = vadd.f32 %v2189_v27, %v1122_v29  ;;  %v1123_v36 = vmul.f32 %v1604_v32, %v1070_v35 }
 0x46c   : > { %v1350_v37 = vclamps-f32 %v1147_v33, 1.0  ;;  %v1148_v38 = vadd.f32 %v2189_v27, %v1125_v34 }
 0x46d   : > { %v1348_v39 = vclamps-f32 %v1145_v62, 1.0  ;;  %v1146_v40 = vadd.f32 %v2189_v27, %v1123_v36 }
 0x46e   : > { %1196 = vst [vmem:[#allocation2 + $0x50] sm:$0xff] %v1350_v37  ;;  %1212 = vst [vmem:[#allocation12 + $0x50] sm:$0xff] %v1350_v37  ;;  %v1351_v41 = vclamps-f32 %v1148_v38, 1.0 }
 0x46f   : > { %1194 = vst [vmem:[#allocation2 + $0x40] sm:$0xff] %v1348_v39  ;;  %1210 = vst [vmem:[#allocation12 + $0x40] sm:$0xff] %v1348_v39  ;;  %v1349_v1 = vclamps-f32 %v1146_v40, 1.0 }
 0x470   : > { %1197 = vst [vmem:[#allocation2 + $0x58] sm:$0xff] %v1351_v41  ;;  %1213 = vst [vmem:[#allocation12 + $0x58] sm:$0xff] %v1351_v41 }
 0x471   : > { %1195 = vst [vmem:[#allocation2 + $0x48] sm:$0xff] %v1349_v1  ;;  %1211 = vst [vmem:[#allocation12 + $0x48] sm:$0xff] %v1349_v1 }
 0x472   : > { %v1455_v43 = vpop.f32.mrb[12].mxu1 }
 0x473   : > { %v1128_v45 = vmul.f32 %v1606_v42, %v1455_v43  ;;  %v1083_v46 = vpop.f32.mrb[13].mxu1 }
 0x474   : > { %v1126_v49 = vmul.f32 %v1608_v31, %v1083_v46  ;;  %v1456_v44 = vpop.f32.mrb[14].mxu1 }
 0x475   : > { %v1151_v6 = vadd.f32 %v2189_v27, %v1128_v45  ;;  %v1129_v52 = vmul.f32 %v1610_v48, %v1456_v44  ;;  %v1086_v54 = vpop.f32.mrb[15].mxu1 }
 0x476   : > { %v1149_v55 = vadd.f32 %v2189_v27, %v1126_v49  ;;  %v1127_v57 = vmul.f32 %v1612_v51, %v1086_v54 }
 0x477   : > { %v1354_v58 = vclamps-f32 %v1151_v6, 1.0  ;;  %v1152_v47 = vadd.f32 %v2189_v27, %v1129_v52 }
 0x478   : > { %v1352_v60 = vclamps-f32 %v1149_v55, 1.0  ;;  %v1150_v61 = vadd.f32 %v2189_v27, %v1127_v57 }
 0x479   : > { %1200 = vst [vmem:[#allocation2 + $0x70] sm:$0xff] %v1354_v58  ;;  %1216 = vst [vmem:[#allocation12 + $0x70] sm:$0xff] %v1354_v58  ;;  %v1355_v8 = vclamps-f32 %v1152_v47, 1.0 }
 0x47a   : > { %1198 = vst [vmem:[#allocation2 + $0x60] sm:$0xff] %v1352_v60  ;;  %1214 = vst [vmem:[#allocation12 + $0x60] sm:$0xff] %v1352_v60  ;;  %v1353_v63 = vclamps-f32 %v1150_v61, 1.0 }
 0x47b   : > { %1201 = vst [vmem:[#allocation2 + $0x78] sm:$0xff] %v1355_v8  ;;  %1217 = vst [vmem:[#allocation12 + $0x78] sm:$0xff] %v1355_v8 }
 0x47c   : > { %1199 = vst [vmem:[#allocation2 + $0x68] sm:$0xff] %v1353_v63  ;;  %1215 = vst [vmem:[#allocation12 + $0x68] sm:$0xff] %v1353_v63 }
 0x47d   : > { %1712 = shalt.err (!%p1709_p13)
}
 0x47e   : > { %s1713_s15 = scalar_lea.hbm %s2252_s4, 2048 }
 0x47f   : > { %p1714_p4 = scmp.ne.s32.totalorder %s2252_s4, %s1713_s15  ;;  %p1719_p7 = scmp.lt.u32.totalorder %s1713_s15, %s2252_s4 }
 0x481   : > { %p1715_p5 = pnand %p1714_p4, %p1487_p0 }
 0x483   : > { %p1716_p6 = pneg %p1715_p5 }
 0x485   : > { %p1721_p9 = pnand %p1719_p7, %p1716_p6 }
 0x487   : > { %1724 = shalt.err (!%p1721_p9)
}
 0x488   : > { %s1798_s6 = smov 128   ;;  %s1799_s7 = smov 8  }
 0x489   : > { %1468 = dma.vmem_to_hbm [thread:$0]  (%p1487_p0), %s1228_s30, 2048, %s2252_s4, [#allocation8], %s1798_s6, %s1798_s6, %s1799_s7  }
 0x48a   : > { %1762 = dma.done.wait (%p1487_p0), [#allocation8], 2048  }
 0x48b   : > { %1764 = vsyncadd (%p1487_p0), [#allocation8], 4294965248 }
 0x48c PF: > { %s17_s20 = sadd.s32 1, %s1787_s20   ;;  %s2268_s15 = smov %s1771_s16 }
 0x48d   : > { %p14_p11 = scmp.ge.s32.totalorder %s17_s20, 4   ;;  %s2269_s16 = smov %s1775_s17 }
 0x48e   : > { %s2270_s17 = smov %s1949_s25  ;;  %s2271_s18 = smov %s1783_s19 }
 0x48f   : > { %s2272_s19 = smov %s2274_s12  ;;  %16 = sbr.rel (!%p14_p11) target bundleno = 5 (0x5), region = 95 }
 0x496   :  { %1243 = vsyncpa [#allocation7], 1 }
 0x497   :  { %1245 = vsyncpa [#allocation7 + $0x1], 1 }
 0x498   :  { %1246 = vsyncpa [#allocation10], 1 }
 0x499   :  { %1247 = vsyncpa [#allocation8], 1 }
 0x49a   :  { %1249 = vsyncpa [#allocation8 + $0x1], 1 }

</bundles_post_ra>
